<compile_context>
chip_gen: v6e
topology: v6e:2x2x1
jax: 0.10.0
libtpu: 0.0.40
codegen_flags: <defaults>
</compile_context>

<pallas_src>
import jax
import jax.numpy as jnp
from jax import lax
from jax.experimental import pallas as pl
from jax.experimental.pallas import tpu as pltpu

KSIZE = 5   # both conv layers: kernel_size=5
PAD = 2     # both conv layers: padding=2


def fused_kernel(x2_ref, w1b_ref, w2b_ref, fc1wb_ref, fc2wb_ref, out_ref,
                 h1_ref, h2_ref, p2_ref):
    BL1, C1 = h1_ref.shape           # (B*L1, 32)
    BL2, C2 = h2_ref.shape           # (B*L2, 64)
    BL3 = p2_ref.shape[0]            # B*L3
    B = out_ref.shape[0]
    L1 = BL1 // B
    L2 = BL2 // B
    L3 = BL3 // B
    KC = KSIZE * C1                  # conv2 im2col contraction depth (160)
    K1 = L3 * C2                     # fc1 contraction depth (512)

    # ---- conv1 (in=1, out=C1, k=5, stride=2, pad=2) + ReLU -------------------
    # x2 row r = b*L1+u holds [x[b,2u], x[b,2u+1]]; neighbouring output steps sit
    # +-1 row away -> fetched with sublane rolls, masked at batch/pad borders.
    # 5-tap VPU accumulation (a (.,5)x(5,C1) matmul would be pure MXU fill latency).
    x2 = x2_ref[...]
    prv = pltpu.roll(x2, 1, axis=0)            # prv[r] = x2[r-1]
    nxt = pltpu.roll(x2, BL1 - 1, axis=0)      # nxt[r] = x2[r+1]
    u = lax.broadcasted_iota(jnp.int32, (BL1, 1), 0) % L1
    prev_ok = (u >= 1).astype(jnp.float32)          # taps 2u-2, 2u-1 exist
    next_ok = (u <= L1 - 2).astype(jnp.float32)     # tap 2u+2 exists
    taps = (prv[:, 0:1] * prev_ok,              # x[b, 2u-2]
            prv[:, 1:2] * prev_ok,              # x[b, 2u-1]
            x2[:, 0:1],                         # x[b, 2u]
            x2[:, 1:2],                         # x[b, 2u+1]
            nxt[:, 0:1] * next_ok)              # x[b, 2u+2]
    acc1 = taps[0] * w1b_ref[0:1, :]
    for k in range(1, KSIZE):
        acc1 = acc1 + taps[k] * w1b_ref[k:k + 1, :]
    acc1 = acc1 + w1b_ref[KSIZE:KSIZE + 1, :]   # bias row
    h1_ref[...] = jnp.maximum(acc1, 0.0)        # (BL1, C1)

    # ---- maxpool1 (k=2, s=2): row index is b*L1+s, so pairs never cross batches
    pooled1 = jnp.maximum(h1_ref[pl.ds(0, BL2, stride=2), :],
                          h1_ref[pl.ds(1, BL2, stride=2), :])        # (BL2, C1)

    # ---- conv2 (in=C1, out=C2, k=5, stride=1, pad=2) + ReLU ------------------
    # ONE K=160 im2col matmul; shifted taps via rolls + border masks (no padded
    # scratch, no zero fill, no misaligned store).
    s_idx = lax.broadcasted_iota(jnp.int32, (BL2, C1), 0) % L2
    cols = []
    for k in range(KSIZE):
        d = k - PAD
        if d == 0:
            cols.append(pooled1)
        else:
            shifted = pltpu.roll(pooled1, (-d) % BL2, axis=0)  # shifted[r] = pooled1[r+d]
            valid = (s_idx >= -d) if d < 0 else (s_idx < L2 - d)
            cols.append(jnp.where(valid, shifted, 0.0))
    cols2 = jnp.concatenate(cols, axis=1)                      # (BL2, 5*C1)
    acc2 = jnp.dot(cols2, w2b_ref[0:KC, :],
                   preferred_element_type=jnp.float32)
    h2_ref[...] = jnp.maximum(acc2 + w2b_ref[KC:KC + 1, :], 0.0)   # (BL2, C2)

    # ---- maxpool2 (k=2, s=2) -------------------------------------------------
    p2_ref[...] = jnp.maximum(h2_ref[pl.ds(0, BL3, stride=2), :],
                              h2_ref[pl.ds(1, BL3, stride=2), :])   # (BL3, C2)

    # ---- fc1 + ReLU: SINGLE K=512 matmul -------------------------------------
    # Flatten (time, channel) onto lanes; fc1 weights were pre-permuted in the
    # wrapper to match this order, so one (B,512)x(512,H) matmul replaces the
    # old 8-step accumulation loop.
    flat = jnp.concatenate(
        [p2_ref[pl.ds(t, B, stride=L3), :] for t in range(L3)], axis=1)  # (B, K1)
    hfc = jnp.dot(flat, fc1wb_ref[0:K1, :], preferred_element_type=jnp.float32)
    hfc = jnp.maximum(hfc + fc1wb_ref[K1:K1 + 1, :], 0.0)               # (B, H)

    # TODO(synk): nn.Dropout(0.5) is identity in eval mode; training-mode masking
    # (pltpu.prng_seed + pltpu.prng_random_bits) is intentionally not implemented.

    # ---- fc2: output lane-padded to 128 -> unmasked final store ---------------
    Hsz = fc2wb_ref.shape[0] - 1
    out_ref[...] = (jnp.dot(hfc, fc2wb_ref[0:Hsz, :],
                            preferred_element_type=jnp.float32)
                    + fc2wb_ref[Hsz:Hsz + 1, :])


def fingerprint_forward(x, params):
    """Wrapper: only weight re-layout (param glue) + a free view of x, then one pallas_call."""
    conv1_w, conv1_b, conv2_w, conv2_b, fc1_w, fc1_b, fc2_w, fc2_b = params
    B, L = x.shape
    assert L % 8 == 0, "input_size must be divisible by 8 (stride-2 conv + two pools)"
    L1, L2, L3 = L // 2, L // 4, L // 8
    C1 = conv1_w.shape[0]            # 32
    C2 = conv2_w.shape[0]            # 64
    H = fc1_w.shape[0]
    NC = fc2_w.shape[0]
    NC_PAD = 128                     # lane-dense output
    assert NC <= NC_PAD

    # Input viewed as (B*L1, 2): row b*L1+u = [x[b,2u], x[b,2u+1]].  Pure reshape,
    # no host-side pad / im2col gather, no extra HBM round-trip.
    x2 = x.reshape(B * L1, 2)

    # conv1 weights (C1,1,5) -> (5,C1), bias appended as row 5.
    w1b = jnp.concatenate([conv1_w[:, 0, :].T, conv1_b[None, :]], axis=0)
    # conv2 im2col weights (C2,C1,5) -> (5*C1, C2), bias appended as last row.
    w2b = jnp.concatenate(
        [jnp.transpose(conv2_w, (2, 1, 0)).reshape(KSIZE * C1, C2),
         conv2_b[None, :]], axis=0)
    # fc1: PyTorch flattens (B,C2,L3) channel-major (c*L3+t); the kernel flattens
    # time-major (t*C2+c), so permute to (L3,C2,H) and flatten; bias as last row.
    fc1wb = jnp.concatenate(
        [jnp.transpose(fc1_w.reshape(H, C2, L3), (2, 1, 0)).reshape(L3 * C2, H),
         fc1_b[None, :]], axis=0)
    # fc2: (NC,H) -> (H,NC) zero-padded to 128 output lanes, bias as last row.
    fc2wb = jnp.zeros((H + 1, NC_PAD), jnp.float32)
    fc2wb = fc2wb.at[:H, :NC].set(fc2_w.T).at[H, :NC].set(fc2_b)

    operands = (x2, w1b, w2b, fc1wb, fc2wb)
    vmem = pl.BlockSpec(memory_space=pltpu.MemorySpace.VMEM)

    out = pl.pallas_call(
        fused_kernel,
        in_specs=[vmem] * len(operands),
        out_specs=vmem,
        out_shape=jax.ShapeDtypeStruct((B, NC_PAD), jnp.float32),
        scratch_shapes=[
            pltpu.VMEM((B * L1, C1), jnp.float32),   # conv1+ReLU output
            pltpu.VMEM((B * L2, C2), jnp.float32),   # conv2+ReLU output
            pltpu.VMEM((B * L3, C2), jnp.float32),   # pool2 output
        ],
        # Single un-gridded call: whole problem is ~0.3 MiB of VMEM.  If batch /
        # sequence scales: grid over batch tiles with dimension_semantics=
        # ("parallel",) (uses both v7x TensorCores), budget scratch against v7x's
        # 64 MiB VMEM via pltpu.CompilerParams(vmem_limit_bytes=...), and cast
        # matmul operands to bf16 (f32 accumulation; keep VPU math f32 on v5e).
    )(*operands)
    return out[:, :NC]


def torch_reference(x, params):
    """Independent pure-JAX re-implementation of the PyTorch forward (eval mode)."""
    conv1_w, conv1_b, conv2_w, conv2_b, fc1_w, fc1_b, fc2_w, fc2_b = params
    B = x.shape[0]
    hi = lax.Precision.HIGHEST
    y = x[:, None, :]                                                   # NCW
    y = lax.conv_general_dilated(y, conv1_w, window_strides=(2,), padding=[(2, 2)],
                                 dimension_numbers=('NCH', 'OIH', 'NCH'), precision=hi)
    y = jax.nn.relu(y + conv1_b[None, :, None])
    y = jnp.max(y.reshape(B, y.shape[1], y.shape[2] // 2, 2), axis=-1)  # pool1
    y = lax.conv_general_dilated(y, conv2_w, window_strides=(1,), padding=[(2, 2)],
                                 dimension_numbers=('NCH', 'OIH', 'NCH'), precision=hi)
    y = jax.nn.relu(y + conv2_b[None, :, None])
    y = jnp.max(y.reshape(B, y.shape[1], y.shape[2] // 2, 2), axis=-1)  # pool2
    y = y.reshape(B, -1)                                                # (B, 64*L/8)
    y = jax.nn.relu(jnp.dot(y, fc1_w.T, precision=hi) + fc1_b)
    y = jnp.dot(y, fc2_w.T, precision=hi) + fc2_b                       # dropout = id (eval)
    return y


if __name__ == "__main__":
    B, L, H, NC = 4, 64, 32, 10          # batch, input_size, hidden_size, num_classes
    key = jax.random.PRNGKey(0)
    keys = jax.random.split(key, 9)

    def uinit(k, shape, fan_in):
        bound = 1.0 / jnp.sqrt(jnp.float32(fan_in))
        return jax.random.uniform(k, shape, jnp.float32, -bound, bound)

    fc_in = (L // 8) * 64
    conv1_w = uinit(keys[0], (32, 1, 5), 1 * 5)
    conv1_b = uinit(keys[1], (32,), 1 * 5)
    conv2_w = uinit(keys[2], (64, 32, 5), 32 * 5)
    conv2_b = uinit(keys[3], (64,), 32 * 5)
    fc1_w = uinit(keys[4], (H, fc_in), fc_in)
    fc1_b = uinit(keys[5], (H,), fc_in)
    fc2_w = uinit(keys[6], (NC, H), H)
    fc2_b = uinit(keys[7], (NC,), H)
    x = jax.random.normal(keys[8], (B, L), jnp.float32)

    params = (conv1_w, conv1_b, conv2_w, conv2_b, fc1_w, fc1_b, fc2_w, fc2_b)

    out = jax.block_until_ready(fingerprint_forward(x, params))
    ref = torch_reference(x, params)

    assert out.shape == (B, NC), out.shape
    if not jnp.allclose(out, ref, atol=5e-3, rtol=5e-3):
        raise AssertionError(
            f"kernel/reference mismatch, max abs diff = {jnp.max(jnp.abs(out - ref))}")
    print("KERNEL_OK")
</pallas_src>

<mosaic_0001>
module attributes {stable_mosaic.version = 11 : i64} {
  func.func @fused_kernel(%arg0: memref<128x2xf32, #tpu.memory_space<vmem>>, %arg1: memref<6x32xf32, #tpu.memory_space<vmem>>, %arg2: memref<161x64xf32, #tpu.memory_space<vmem>>, %arg3: memref<513x32xf32, #tpu.memory_space<vmem>>, %arg4: memref<33x128xf32, #tpu.memory_space<vmem>>, %arg5: memref<4x128xf32, #tpu.memory_space<vmem>>, %arg6: memref<128x32xf32, #tpu.memory_space<vmem>>, %arg7: memref<64x64xf32, #tpu.memory_space<vmem>>, %arg8: memref<32x64xf32, #tpu.memory_space<vmem>>) attributes {dimension_semantics = [], scalar_prefetch = 0 : i64, scratch_operands = 3 : i64, tpu.core_type = #tpu.core_type<tc>} {
    %c0 = arith.constant 0 : index
    %c0_0 = arith.constant 0 : index
    %0 = vector.load %arg0[%c0, %c0_0] : memref<128x2xf32, #tpu.memory_space<vmem>>, vector<128x2xf32>
    %c1_i32 = arith.constant 1 : i32
    %1 = tpu.dynamic_rotate %0 by %c1_i32 dim 0 : vector<128x2xf32>, i32 -> vector<128x2xf32>
    %c127_i32 = arith.constant 127 : i32
    %2 = tpu.dynamic_rotate %0 by %c127_i32 dim 0 : vector<128x2xf32>, i32 -> vector<128x2xf32>
    %3 = tpu.iota {dimensions = array<i32: 0>} : vector<128x1xi32>
    %c32_i32 = arith.constant 32 : i32
    %c0_i32 = arith.constant 0 : i32
    %4 = arith.cmpi eq, %c32_i32, %c0_i32 : i32
    %c1_i32_1 = arith.constant 1 : i32
    %5 = arith.select %4, %c1_i32_1, %c32_i32 : i32
    %6 = vector.broadcast %5 : i32 to vector<128x1xi32>
    %7 = arith.remsi %3, %6 : vector<128x1xi32>
    %c0_i32_2 = arith.constant 0 : i32
    %8 = vector.broadcast %c0_i32_2 : i32 to vector<128x1xi32>
    %9 = arith.cmpi ne, %7, %8 : vector<128x1xi32>
    %c0_i32_3 = arith.constant 0 : i32
    %10 = vector.broadcast %c0_i32_3 : i32 to vector<128x1xi32>
    %11 = arith.cmpi slt, %7, %10 : vector<128x1xi32>
    %c0_i32_4 = arith.constant 0 : i32
    %12 = arith.cmpi slt, %5, %c0_i32_4 : i32
    %13 = vector.broadcast %12 : i1 to vector<128x1xi1>
    %14 = vector.broadcast %13 : vector<128x1xi1> to vector<128x1xi1>
    %15 = arith.xori %11, %14 : vector<128x1xi1>
    %16 = arith.andi %15, %9 : vector<128x1xi1>
    %17 = vector.broadcast %5 : i32 to vector<128x1xi32>
    %18 = arith.addi %7, %17 : vector<128x1xi32>
    %19 = arith.select %16, %18, %7 : vector<128x1xi1>, vector<128x1xi32>
    %c1_i32_5 = arith.constant 1 : i32
    %20 = vector.broadcast %c1_i32_5 : i32 to vector<128x1xi32>
    %21 = arith.cmpi sge, %19, %20 : vector<128x1xi32>
    %22 = arith.extui %21 : vector<128x1xi1> to vector<128x1xi32>
    %23 = arith.sitofp %22 : vector<128x1xi32> to vector<128x1xf32>
    %c30_i32 = arith.constant 30 : i32
    %24 = vector.broadcast %c30_i32 : i32 to vector<128x1xi32>
    %25 = arith.cmpi sle, %19, %24 : vector<128x1xi32>
    %26 = arith.extui %25 : vector<128x1xi1> to vector<128x1xi32>
    %27 = arith.sitofp %26 : vector<128x1xi32> to vector<128x1xf32>
    %28 = vector.extract_strided_slice %1 {offsets = [0, 0], sizes = [128, 1], strides = [1, 1]} : vector<128x2xf32> to vector<128x1xf32>
    %29 = arith.mulf %28, %23 : vector<128x1xf32>
    %30 = vector.extract_strided_slice %1 {offsets = [0, 1], sizes = [128, 1], strides = [1, 1]} : vector<128x2xf32> to vector<128x1xf32>
    %31 = arith.mulf %30, %23 : vector<128x1xf32>
    %32 = vector.extract_strided_slice %0 {offsets = [0, 0], sizes = [128, 1], strides = [1, 1]} : vector<128x2xf32> to vector<128x1xf32>
    %33 = vector.extract_strided_slice %0 {offsets = [0, 1], sizes = [128, 1], strides = [1, 1]} : vector<128x2xf32> to vector<128x1xf32>
    %34 = vector.extract_strided_slice %2 {offsets = [0, 0], sizes = [128, 1], strides = [1, 1]} : vector<128x2xf32> to vector<128x1xf32>
    %35 = arith.mulf %34, %27 : vector<128x1xf32>
    %c0_6 = arith.constant 0 : index
    %c0_7 = arith.constant 0 : index
    %36 = vector.load %arg1[%c0_6, %c0_7] : memref<6x32xf32, #tpu.memory_space<vmem>>, vector<1x32xf32>
    %37 = vector.broadcast %29 : vector<128x1xf32> to vector<128x32xf32>
    %38 = vector.broadcast %36 : vector<1x32xf32> to vector<128x32xf32>
    %39 = arith.mulf %37, %38 : vector<128x32xf32>
    %c1 = arith.constant 1 : index
    %c0_8 = arith.constant 0 : index
    %40 = vector.load %arg1[%c1, %c0_8] : memref<6x32xf32, #tpu.memory_space<vmem>>, vector<1x32xf32>
    %41 = vector.broadcast %31 : vector<128x1xf32> to vector<128x32xf32>
    %42 = vector.broadcast %40 : vector<1x32xf32> to vector<128x32xf32>
    %43 = arith.mulf %41, %42 : vector<128x32xf32>
    %44 = arith.addf %39, %43 : vector<128x32xf32>
    %c2 = arith.constant 2 : index
    %c0_9 = arith.constant 0 : index
    %45 = vector.load %arg1[%c2, %c0_9] : memref<6x32xf32, #tpu.memory_space<vmem>>, vector<1x32xf32>
    %46 = vector.broadcast %32 : vector<128x1xf32> to vector<128x32xf32>
    %47 = vector.broadcast %45 : vector<1x32xf32> to vector<128x32xf32>
    %48 = arith.mulf %46, %47 : vector<128x32xf32>
    %49 = arith.addf %44, %48 : vector<128x32xf32>
    %c3 = arith.constant 3 : index
    %c0_10 = arith.constant 0 : index
    %50 = vector.load %arg1[%c3, %c0_10] : memref<6x32xf32, #tpu.memory_space<vmem>>, vector<1x32xf32>
    %51 = vector.broadcast %33 : vector<128x1xf32> to vector<128x32xf32>
    %52 = vector.broadcast %50 : vector<1x32xf32> to vector<128x32xf32>
    %53 = arith.mulf %51, %52 : vector<128x32xf32>
    %54 = arith.addf %49, %53 : vector<128x32xf32>
    %c4 = arith.constant 4 : index
    %c0_11 = arith.constant 0 : index
    %55 = vector.load %arg1[%c4, %c0_11] : memref<6x32xf32, #tpu.memory_space<vmem>>, vector<1x32xf32>
    %56 = vector.broadcast %35 : vector<128x1xf32> to vector<128x32xf32>
    %57 = vector.broadcast %55 : vector<1x32xf32> to vector<128x32xf32>
    %58 = arith.mulf %56, %57 : vector<128x32xf32>
    %59 = arith.addf %54, %58 : vector<128x32xf32>
    %c5 = arith.constant 5 : index
    %c0_12 = arith.constant 0 : index
    %60 = vector.load %arg1[%c5, %c0_12] : memref<6x32xf32, #tpu.memory_space<vmem>>, vector<1x32xf32>
    %61 = vector.broadcast %60 : vector<1x32xf32> to vector<128x32xf32>
    %62 = arith.addf %59, %61 : vector<128x32xf32>
    %cst = arith.constant 0.000000e+00 : f32
    %63 = vector.broadcast %cst : f32 to vector<128x32xf32>
    %64 = arith.maximumf %62, %63 : vector<128x32xf32>
    %c0_13 = arith.constant 0 : index
    %c0_14 = arith.constant 0 : index
    %65 = vector.load %arg6[%c0_13, %c0_14] : memref<128x32xf32, #tpu.memory_space<vmem>>, vector<128x32xf32>
    tpu.vector_store %arg6[%c0_13, %c0_14], %64 {strides = array<i32>} : memref<128x32xf32, #tpu.memory_space<vmem>>, vector<128x32xf32>,
    %c0_15 = arith.constant 0 : index
    %c0_16 = arith.constant 0 : index
    %66 = tpu.strided_load %arg6[%c0_15, %c0_16] {strides = array<i32: 2, 1>} : memref<128x32xf32, #tpu.memory_space<vmem>>, vector<64x32xf32>
    %c1_17 = arith.constant 1 : index
    %c0_18 = arith.constant 0 : index
    %67 = tpu.strided_load %arg6[%c1_17, %c0_18] {strides = array<i32: 2, 1>} : memref<128x32xf32, #tpu.memory_space<vmem>>, vector<64x32xf32>
    %68 = arith.maximumf %66, %67 : vector<64x32xf32>
    %69 = tpu.iota {dimensions = array<i32: 0>} : vector<64x32xi32>
    %c16_i32 = arith.constant 16 : i32
    %c0_i32_19 = arith.constant 0 : i32
    %70 = arith.cmpi eq, %c16_i32, %c0_i32_19 : i32
    %c1_i32_20 = arith.constant 1 : i32
    %71 = arith.select %70, %c1_i32_20, %c16_i32 : i32
    %72 = vector.broadcast %71 : i32 to vector<64x32xi32>
    %73 = arith.remsi %69, %72 : vector<64x32xi32>
    %c0_i32_21 = arith.constant 0 : i32
    %74 = vector.broadcast %c0_i32_21 : i32 to vector<64x32xi32>
    %75 = arith.cmpi ne, %73, %74 : vector<64x32xi32>
    %c0_i32_22 = arith.constant 0 : i32
    %76 = vector.broadcast %c0_i32_22 : i32 to vector<64x32xi32>
    %77 = arith.cmpi slt, %73, %76 : vector<64x32xi32>
    %c0_i32_23 = arith.constant 0 : i32
    %78 = arith.cmpi slt, %71, %c0_i32_23 : i32
    %79 = vector.broadcast %78 : i1 to vector<64x32xi1>
    %80 = vector.broadcast %79 : vector<64x32xi1> to vector<64x32xi1>
    %81 = arith.xori %77, %80 : vector<64x32xi1>
    %82 = arith.andi %81, %75 : vector<64x32xi1>
    %83 = vector.broadcast %71 : i32 to vector<64x32xi32>
    %84 = arith.addi %73, %83 : vector<64x32xi32>
    %85 = arith.select %82, %84, %73 : vector<64x32xi1>, vector<64x32xi32>
    %c2_i32 = arith.constant 2 : i32
    %86 = tpu.dynamic_rotate %68 by %c2_i32 dim 0 : vector<64x32xf32>, i32 -> vector<64x32xf32>
    %c2_i32_24 = arith.constant 2 : i32
    %87 = vector.broadcast %c2_i32_24 : i32 to vector<64x32xi32>
    %88 = arith.cmpi sge, %85, %87 : vector<64x32xi32>
    %cst_25 = arith.constant 0.000000e+00 : f32
    %89 = vector.broadcast %cst_25 : f32 to vector<64x32xf32>
    %90 = arith.select %88, %86, %89 : vector<64x32xi1>, vector<64x32xf32>
    %c1_i32_26 = arith.constant 1 : i32
    %91 = tpu.dynamic_rotate %68 by %c1_i32_26 dim 0 : vector<64x32xf32>, i32 -> vector<64x32xf32>
    %c1_i32_27 = arith.constant 1 : i32
    %92 = vector.broadcast %c1_i32_27 : i32 to vector<64x32xi32>
    %93 = arith.cmpi sge, %85, %92 : vector<64x32xi32>
    %cst_28 = arith.constant 0.000000e+00 : f32
    %94 = vector.broadcast %cst_28 : f32 to vector<64x32xf32>
    %95 = arith.select %93, %91, %94 : vector<64x32xi1>, vector<64x32xf32>
    %c63_i32 = arith.constant 63 : i32
    %96 = tpu.dynamic_rotate %68 by %c63_i32 dim 0 : vector<64x32xf32>, i32 -> vector<64x32xf32>
    %c15_i32 = arith.constant 15 : i32
    %97 = vector.broadcast %c15_i32 : i32 to vector<64x32xi32>
    %98 = arith.cmpi slt, %85, %97 : vector<64x32xi32>
    %cst_29 = arith.constant 0.000000e+00 : f32
    %99 = vector.broadcast %cst_29 : f32 to vector<64x32xf32>
    %100 = arith.select %98, %96, %99 : vector<64x32xi1>, vector<64x32xf32>
    %c62_i32 = arith.constant 62 : i32
    %101 = tpu.dynamic_rotate %68 by %c62_i32 dim 0 : vector<64x32xf32>, i32 -> vector<64x32xf32>
    %c14_i32 = arith.constant 14 : i32
    %102 = vector.broadcast %c14_i32 : i32 to vector<64x32xi32>
    %103 = arith.cmpi slt, %85, %102 : vector<64x32xi32>
    %cst_30 = arith.constant 0.000000e+00 : f32
    %104 = vector.broadcast %cst_30 : f32 to vector<64x32xf32>
    %105 = arith.select %103, %101, %104 : vector<64x32xi1>, vector<64x32xf32>
    %106 = tpu.concatenate %90, %95, %68, %100, %105 in 1 : vector<64x32xf32>, vector<64x32xf32>, vector<64x32xf32>, vector<64x32xf32>, vector<64x32xf32> -> vector<64x160xf32>
    %c0_31 = arith.constant 0 : index
    %c0_32 = arith.constant 0 : index
    %107 = vector.load %arg2[%c0_31, %c0_32] : memref<161x64xf32, #tpu.memory_space<vmem>>, vector<160x64xf32>
    %cst_33 = arith.constant dense<0.000000e+00> : vector<64x64xf32>
    %108 = tpu.matmul %106, %107, %cst_33 {dimension_numbers = #tpu.dot_dimension_numbers<[1], [0], [0], [1], [0, 0, 1, 1], [], []>} : vector<64x160xf32>, vector<160x64xf32>, vector<64x64xf32> -> vector<64x64xf32>
    %c160 = arith.constant 160 : index
    %c0_34 = arith.constant 0 : index
    %109 = vector.load %arg2[%c160, %c0_34] : memref<161x64xf32, #tpu.memory_space<vmem>>, vector<1x64xf32>
    %110 = vector.broadcast %109 : vector<1x64xf32> to vector<64x64xf32>
    %111 = arith.addf %108, %110 : vector<64x64xf32>
    %cst_35 = arith.constant 0.000000e+00 : f32
    %112 = vector.broadcast %cst_35 : f32 to vector<64x64xf32>
    %113 = arith.maximumf %111, %112 : vector<64x64xf32>
    %c0_36 = arith.constant 0 : index
    %c0_37 = arith.constant 0 : index
    %114 = vector.load %arg7[%c0_36, %c0_37] : memref<64x64xf32, #tpu.memory_space<vmem>>, vector<64x64xf32>
    tpu.vector_store %arg7[%c0_36, %c0_37], %113 {strides = array<i32>} : memref<64x64xf32, #tpu.memory_space<vmem>>, vector<64x64xf32>,
    %c0_38 = arith.constant 0 : index
    %c0_39 = arith.constant 0 : index
    %115 = tpu.strided_load %arg7[%c0_38, %c0_39] {strides = array<i32: 2, 1>} : memref<64x64xf32, #tpu.memory_space<vmem>>, vector<32x64xf32>
    %c1_40 = arith.constant 1 : index
    %c0_41 = arith.constant 0 : index
    %116 = tpu.strided_load %arg7[%c1_40, %c0_41] {strides = array<i32: 2, 1>} : memref<64x64xf32, #tpu.memory_space<vmem>>, vector<32x64xf32>
    %117 = arith.maximumf %115, %116 : vector<32x64xf32>
    %c0_42 = arith.constant 0 : index
    %c0_43 = arith.constant 0 : index
    %118 = vector.load %arg8[%c0_42, %c0_43] : memref<32x64xf32, #tpu.memory_space<vmem>>, vector<32x64xf32>
    tpu.vector_store %arg8[%c0_42, %c0_43], %117 {strides = array<i32>} : memref<32x64xf32, #tpu.memory_space<vmem>>, vector<32x64xf32>,
    %c0_44 = arith.constant 0 : index
    %c0_45 = arith.constant 0 : index
    %119 = tpu.strided_load %arg8[%c0_44, %c0_45] {strides = array<i32: 8, 1>} : memref<32x64xf32, #tpu.memory_space<vmem>>, vector<4x64xf32>
    %c1_46 = arith.constant 1 : index
    %c0_47 = arith.constant 0 : index
    %120 = tpu.strided_load %arg8[%c1_46, %c0_47] {strides = array<i32: 8, 1>} : memref<32x64xf32, #tpu.memory_space<vmem>>, vector<4x64xf32>
    %c2_48 = arith.constant 2 : index
    %c0_49 = arith.constant 0 : index
    %121 = tpu.strided_load %arg8[%c2_48, %c0_49] {strides = array<i32: 8, 1>} : memref<32x64xf32, #tpu.memory_space<vmem>>, vector<4x64xf32>
    %c3_50 = arith.constant 3 : index
    %c0_51 = arith.constant 0 : index
    %122 = tpu.strided_load %arg8[%c3_50, %c0_51] {strides = array<i32: 8, 1>} : memref<32x64xf32, #tpu.memory_space<vmem>>, vector<4x64xf32>
    %c4_52 = arith.constant 4 : index
    %c0_53 = arith.constant 0 : index
    %123 = tpu.strided_load %arg8[%c4_52, %c0_53] {strides = array<i32: 8, 1>} : memref<32x64xf32, #tpu.memory_space<vmem>>, vector<4x64xf32>
    %c5_54 = arith.constant 5 : index
    %c0_55 = arith.constant 0 : index
    %124 = tpu.strided_load %arg8[%c5_54, %c0_55] {strides = array<i32: 8, 1>} : memref<32x64xf32, #tpu.memory_space<vmem>>, vector<4x64xf32>
    %c6 = arith.constant 6 : index
    %c0_56 = arith.constant 0 : index
    %125 = tpu.strided_load %arg8[%c6, %c0_56] {strides = array<i32: 8, 1>} : memref<32x64xf32, #tpu.memory_space<vmem>>, vector<4x64xf32>
    %c7 = arith.constant 7 : index
    %c0_57 = arith.constant 0 : index
    %126 = tpu.strided_load %arg8[%c7, %c0_57] {strides = array<i32: 8, 1>} : memref<32x64xf32, #tpu.memory_space<vmem>>, vector<4x64xf32>
    %127 = tpu.concatenate %119, %120, %121, %122, %123, %124, %125, %126 in 1 : vector<4x64xf32>, vector<4x64xf32>, vector<4x64xf32>, vector<4x64xf32>, vector<4x64xf32>, vector<4x64xf32>, vector<4x64xf32>, vector<4x64xf32> -> vector<4x512xf32>
    %c0_58 = arith.constant 0 : index
    %c0_59 = arith.constant 0 : index
    %128 = vector.load %arg3[%c0_58, %c0_59] : memref<513x32xf32, #tpu.memory_space<vmem>>, vector<512x32xf32>
    %cst_60 = arith.constant dense<0.000000e+00> : vector<4x32xf32>
    %129 = tpu.matmul %127, %128, %cst_60 {dimension_numbers = #tpu.dot_dimension_numbers<[1], [0], [0], [1], [0, 0, 1, 1], [], []>} : vector<4x512xf32>, vector<512x32xf32>, vector<4x32xf32> -> vector<4x32xf32>
    %c512 = arith.constant 512 : index
    %c0_61 = arith.constant 0 : index
    %130 = vector.load %arg3[%c512, %c0_61] : memref<513x32xf32, #tpu.memory_space<vmem>>, vector<1x32xf32>
    %131 = vector.broadcast %130 : vector<1x32xf32> to vector<4x32xf32>
    %132 = arith.addf %129, %131 : vector<4x32xf32>
    %cst_62 = arith.constant 0.000000e+00 : f32
    %133 = vector.broadcast %cst_62 : f32 to vector<4x32xf32>
    %134 = arith.maximumf %132, %133 : vector<4x32xf32>
    %c0_63 = arith.constant 0 : index
    %c0_64 = arith.constant 0 : index
    %135 = vector.load %arg4[%c0_63, %c0_64] : memref<33x128xf32, #tpu.memory_space<vmem>>, vector<32x128xf32>
    %cst_65 = arith.constant dense<0.000000e+00> : vector<4x128xf32>
    %136 = tpu.matmul %134, %135, %cst_65 {dimension_numbers = #tpu.dot_dimension_numbers<[1], [0], [0], [1], [0, 0, 1, 1], [], []>} : vector<4x32xf32>, vector<32x128xf32>, vector<4x128xf32> -> vector<4x128xf32>
    %c32 = arith.constant 32 : index
    %c0_66 = arith.constant 0 : index
    %137 = vector.load %arg4[%c32, %c0_66] : memref<33x128xf32, #tpu.memory_space<vmem>>, vector<1x128xf32>
    %138 = vector.broadcast %137 : vector<1x128xf32> to vector<4x128xf32>
    %139 = arith.addf %136, %138 : vector<4x128xf32>
    %c0_67 = arith.constant 0 : index
    %c0_68 = arith.constant 0 : index
    %140 = vector.load %arg5[%c0_67, %c0_68] : memref<4x128xf32, #tpu.memory_space<vmem>>, vector<4x128xf32>
    tpu.vector_store %arg5[%c0_67, %c0_68], %139 {strides = array<i32>} : memref<4x128xf32, #tpu.memory_space<vmem>>, vector<4x128xf32>,
    return
  }
}

</mosaic_0001>

<bundles_post_ra>
// kernel: tpu_custom_call.1
= control target key start
LH: loop header
LB: loop body
LE: loop exit
PB: predicated region body
PF: predicated region fallthrough
CT: control target
= control target key end

     0   :  { %v53_v2 = vlaneseq  ;;  %v2175_v4 = vmov 0   ;;  %v2176_v7 = vmov 1   ;;  %v3515_v12 = vmov 0.0   ;;  %s3509_s0 = inlined_call_operand.vmem [shape: f32[128,2], index: 0, kind: input, shape index: {}]   ;;  %s3510_s1 = inlined_call_operand.vmem [shape: f32[6,32], index: 1, kind: input, shape index: {}]   ;;  %s3511_s2 = inlined_call_operand.vmem [shape: f32[161,64], index: 2, kind: input, shape index: {}]   ;;  %s3512_s3 = inlined_call_operand.vmem [shape: f32[513,32], index: 3, kind: input, shape index: {}]   ;;  %s3513_s4 = inlined_call_operand.vmem [shape: f32[33,128], index: 4, kind: input, shape index: {}]   ;;  %s3514_s5 = inlined_call_operand.hbm [shape: f32[4,128], index: 5, kind: output, shape index: {}]  }
   0x1   :  { %v2216_v0 = vld [vmem:[%s3509_s0 + $0x68] sm:$0xff]  ;;  %v2221_v1 = vld [vmem:[%s3509_s0 + $0x70] sm:$0xff]  ;;  %v2226_v3 = vld [vmem:[%s3509_s0 + $0x78] sm:$0xff]  ;;  %2073 = vset.pattern.permute.xlu1 %v2175_v4  ;;  %2075 = vset.pattern.permute.xlu0 %v2176_v7 }
   0x2   :  { %v50_v5 = vrot.slane %v2216_v0, 7  ;;  %v51_v6 = vrot.slane %v2221_v1, 7  ;;  %v52_v8 = vrot.slane %v2226_v3, 7  ;;  %v2236_v9 = vld [vmem:[%s3509_s0] sm:$0xff]  ;;  %v2238_v10 = vshrl.u32 %v53_v2, 7  ;;  %1467 = vmatprep.subr.mxu0 %v3515_v12  ;;  %v2253_v16 = vld [vmem:[%s3509_s0 + $0x8] sm:$0xff] }
   0x3   :  { %v37_v11 = vrot.slane %v2236_v9, 7 }
   0x4   :  { %vm55_vm0 = vcmp.lt.s32.totalorder %v2238_v10, 1  ;;  %v124_v13 = vand.u32 31, %v2238_v10 }
   0x5   :  { %v57_v14 = vsel %vm55_vm0, %v50_v5, %v51_v6  ;;  %v71_v15 = vsel %vm55_vm0, %v52_v8, %v37_v11  ;;  %v56_v17 = vsel %vm55_vm0, %v51_v6, %v52_v8 }
   0x6   :  { %513 = vperm.xlu1 %2073, %v57_v14   ;;  %vm312_vm1 = vcmp.ge.s32.totalorder %v124_v13, 1 }
   0x7   :  { %v1953_v18 = vsel %vm312_vm1, 1.0, %v3515_v12 }
   0x8   :  { %10 = vsyncpa [#allocation6], 0  ;;  %v2258_v19 = vmul.f32 %v1953_v18, %v71_v15  ;;  %v38_v20 = vrot.slane %v2253_v16, 7  ;;  %v2264_v21 = vld [vmem:[%s3509_s0 + $0x10] sm:$0xff]  ;;  %v86_v23 = vrot.slane %v2221_v1, 1  ;;  %v2274_v25 = vadd.s32 32, %v2238_v10 }
   0x9   :  { %v39_v22 = vrot.slane %v2264_v21, 7  ;;  %v72_v26 = vrot.slane %v2236_v9, 1  ;;  %v87_v27 = vrot.slane %v2226_v3, 1  ;;  %vm88_vm2 = vcmp.lt.s32.totalorder %v2238_v10, 7  ;;  %v2300_v31 = vld [vmem:[%s3509_s0 + $0x18] sm:$0xff]  ;;  %v2305_v32 = vld [vmem:[%s3509_s0 + $0x20] sm:$0xff] }
   0xa   :  { %518 = vperm.xlu1 %2073, %v56_v17   ;;  %543 = vperm.xlu0 %2075, %v2258_v19   ;;  %v2271_v24 = vsel %vm55_vm0, %v37_v11, %v38_v20  ;;  %v152_v33 = vand.u32 31, %v2274_v25  ;;  %v40_v34 = vrot.slane %v2300_v31, 7  ;;  %v41_v35 = vrot.slane %v2305_v32, 7  ;;  %v2323_v40 = vld [vmem:[%s3509_s0 + $0x38] sm:$0xff]  ;;  %v2328_v41 = vld [vmem:[%s3509_s0 + $0x40] sm:$0xff]  ;;  %v2375_v58 = vld [vmem:[%s3509_s0 + $0x28] sm:$0xff] }
   0xb   :  { %v2284_v28 = vsel %vm88_vm2, %v86_v23, %v87_v27  ;;  %v2290_v29 = vsel %vm88_vm2, %v87_v27, %v72_v26  ;;  %v2295_v30 = vsel %vm55_vm0, %v38_v20, %v39_v22  ;;  %v112_v38 = vadd.s32 64, %v2238_v10  ;;  %v2351_v50 = vld [vmem:[%s3509_s0 + $0x58] sm:$0xff]  ;;  %v2356_v51 = vld [vmem:[%s3509_s0 + $0x60] sm:$0xff]  ;;  %s2178_s11 = smov 32   ;;  %s2179_s16 = smov 64  }
   0xc   :  { %vm316_vm3 = vcmp.ge.s32.totalorder %v152_v33, 1  ;;  %v67_v36 = vsel %vm55_vm0, %v40_v34, %v41_v35  ;;  %v44_v43 = vrot.slane %v2323_v40, 7  ;;  %v45_v44 = vrot.slane %v2328_v41, 7  ;;  %s2182_s29 = smov [#allocation5]  }
   0xd   :  { %v1954_v37 = vsel %vm316_vm3, 1.0, %v3515_v12  ;;  %v180_v42 = vand.u32 31, %v112_v38  ;;  %v68_v45 = vsel %vm55_vm0, %v39_v22, %v40_v34  ;;  %v116_v48 = vadd.s32 96, %v2238_v10  ;;  %s1945_s30 = sshll.u32 %s2182_s29, 4  ;;  %s1946_s30 = int_to_ptr.vmem [resolvable:$true] %s1945_s30 }
   0xe   :  { %2074 = vset.pattern.permute.xlu1 %v2176_v7  ;;  %603 = vperm.xlu0 %2075, %v56_v17   ;;  %v412_v39 = vmul.f32 %v1954_v37, %v67_v36  ;;  %v63_v46 = vsel %vm55_vm0, %v44_v43, %v45_v44  ;;  %v48_v53 = vrot.slane %v2351_v50, 7  ;;  %v49_v54 = vrot.slane %v2356_v51, 7  ;;  %p2158_p1 = scmp.lt.s32.totalorder %s1946_s30, %s1946_s30 }
   0xf   :  { %547 = vperm.xlu1 %2074, %v2271_v24   ;;  %vm320_vm4 = vcmp.ge.s32.totalorder %v180_v42, 1  ;;  %v208_v52 = vand.u32 31, %v116_v48  ;;  %v42_v59 = vrot.slane %v2375_v58, 7  ;;  %v119_v62 = vadd.s32 120, %v2238_v10 }
  0x10   :  { %v1955_v47 = vsel %vm320_vm4, 1.0, %v3515_v12  ;;  %v59_v55 = vsel %vm55_vm0, %v48_v53, %v49_v54  ;;  %v2385_v60 = vsel %vm55_vm0, %v49_v54, %v50_v5  ;;  %v73_v63 = vrot.slane %v2253_v16, 1 }
  0x11   :  { %v2345_v49 = vmul.f32 %v1955_v47, %v63_v46  ;;  %vm324_vm5 = vcmp.ge.s32.totalorder %v208_v52, 1  ;;  %v66_v61 = vsel %vm55_vm0, %v41_v35, %v42_v59  ;;  %v229_v2 = vand.u32 31, %v119_v62 }
  0x12   :  { %551 = vperm.xlu0 %2075, %v2295_v30   ;;  %v1956_v56 = vsel %vm324_vm5, 1.0, %v3515_v12  ;;  %v74_v8 = vrot.slane %v2264_v21, 1  ;;  %v75_v15 = vrot.slane %v2300_v31, 1  ;;  %v77_v22 = vrot.slane %v2375_v58, 1 }
  0x13   :  { %599 = vperm.xlu1 %2074, %v57_v14   ;;  %v2370_v57 = vmul.f32 %v1956_v56, %v59_v55  ;;  %vm375_vm6 = vcmp.le.s32.totalorder %v229_v2, 30  ;;  %v2420_v14 = vld [vmem:[%s3509_s0 + $0x30] sm:$0xff]  ;;  %vm1014_vm10 = vcmask 261120   ;;  %vm1271_vm11 = vcmp.lt.s32.totalorder %v2238_v10, 6 }
  0x14   :  { %v1960_v5 = vsel %vm375_vm6, 1.0, %v3515_v12  ;;  %v102_v11 = vsel %vm88_vm2, %v73_v63, %v74_v8  ;;  %v43_v17 = vrot.slane %v2420_v14, 7  ;;  %v101_v18 = vsel %vm88_vm2, %v74_v8, %v75_v15 }
  0x15   :  { %v439_v6 = vmul.f32 %v1960_v5, %v2290_v29  ;;  %v2455_v29 = vld [vmem:[%s3509_s0 + $0x48] sm:$0xff]  ;;  %v78_v34 = vrot.slane %v2420_v14, 1  ;;  %vm1174_vm12 = vcmp.lt.s32.totalorder %v2238_v10, 2 }
  0x16   :  { %765 = vperm.xlu0 %2075, %v2253_v16   ;;  %v65_v27 = vsel %vm55_vm0, %v42_v59, %v43_v17  ;;  %v81_v33 = vrot.slane %v2455_v29, 1  ;;  %v46_v37 = vrot.slane %v2455_v29, 7 }
  0x17   :  { %2076 = vset.pattern.permute.xlu1 %v2175_v4  ;;  %v98_v36 = vsel %vm88_vm2, %v77_v22, %v78_v34 }
  0x18   :  { %645 = vperm.xlu1 %2076, %v2236_v9   ;;  %v62_v38 = vsel %vm55_vm0, %v45_v44, %v46_v37  ;;  %v2499_v44 = vadd.s32 56, %v2238_v10 }
  0x1a   :  { %821 = vperm.xlu0 %2075, %v2226_v3  }
  0x1c   :  { %715 = vperm.xlu1 %2076, %v2221_v1  }
  0x1e   :  { %559 = vperm.xlu0 %2075, %v412_v39  }
  0x20   :  { %720 = vperm.xlu1 %2076, %v2226_v3   ;;  %v103_v3 = vsel %vm88_vm2, %v72_v26, %v73_v63 }
  0x22   :  { %769 = vperm.xlu0 %2075, %v2264_v21  }
  0x24   :  { %458 = vperm.xlu1 %2076, %v68_v45  }
  0x26   :  { %777 = vperm.xlu0 %2075, %v2305_v32  }
  0x28   :  { %2077 = vset.pattern.permute.xlu1 %v2176_v7 }
  0x29   :  { %555 = vperm.xlu1 %2077, %v68_v45  }
  0x2a   :  { %575 = vperm.xlu0 %2075, %v2345_v49  }
  0x2d   :  { %761 = vperm.xlu1 %2077, %v2236_v9   ;;  %v2409_v9 = vadd.s32 24, %v2238_v10 }
  0x2e   :  { %789 = vperm.xlu0 %2075, %v2323_v40  }
  0x2f   :  { %v145_v13 = vand.u32 31, %v2409_v9 }
  0x31   :  { %817 = vperm.xlu1 %2077, %v2221_v1   ;;  %vm363_vm7 = vcmp.le.s32.totalorder %v145_v13, 30  ;;  %v173_v1 = vand.u32 31, %v2499_v44 }
  0x32   :  { %793 = vperm.xlu0 %2075, %v2328_v41   ;;  %v1957_v20 = vsel %vm363_vm7, 1.0, %v3515_v12 }
  0x33   :  { %vm367_vm8 = vcmp.le.s32.totalorder %v173_v1, 30  ;;  %v2602_v1 = vld [vmem:[%s3510_s1 + $0x3] ss:$0 sm:$0xff] }
  0x34   :  { %v1958_v56 = vsel %vm367_vm8, 1.0, %v3515_v12 }
  0x35   :  { %2078 = vset.pattern.permute.xlu1 %v2175_v4 }
  0x36   :  { %591 = vperm.xlu0 %2075, %v2370_v57   ;;  %655 = vperm.xlu1 %2078, %v2264_v21   ;;  %v64_v21 = vsel %vm55_vm0, %v43_v17, %v44_v43 }
  0x3a   :  { %805 = vperm.xlu0 %2075, %v2351_v50   ;;  %463 = vperm.xlu1 %2078, %v412_v39   ;;  %v85_v39 = vrot.slane %v2216_v0, 1 }
  0x3c   :  { %v90_v43 = vsel %vm88_vm2, %v85_v39, %v86_v23  ;;  %v79_v23 = vrot.slane %v2323_v40, 1 }
  0x3e   :  { %809 = vperm.xlu0 %2075, %v2356_v51   ;;  %468 = vperm.xlu1 %2078, %v66_v61   ;;  %v97_v54 = vsel %vm88_vm2, %v78_v34, %v79_v23 }
  0x42   :  { %2095 = vset.pattern.permute.xlu0 %v2175_v4  ;;  %2079 = vset.pattern.permute.xlu1 %v2176_v7 }
  0x43   :  { %443 = vperm.xlu0 %2095, %v2258_v19   ;;  %563 = vperm.xlu1 %2079, %v66_v61  }
  0x47   :  { %448 = vperm.xlu0 %2095, %v2271_v24   ;;  %2080 = vset.pattern.permute.xlu1 %v2175_v4 }
  0x48   :  { %863 = vperm.xlu1 %2080, %v103_v3  }
  0x4b   :  { %650 = vperm.xlu0 %2095, %v2253_v16   ;;  %v76_v16 = vrot.slane %v2305_v32, 1 }
  0x4c   :  { %933 = vperm.xlu1 %2080, %v2284_v28   ;;  %v2448_v28 = vld [vmem:[%s3509_s0 + $0x50] sm:$0xff]  ;;  %s2180_s0 = smov 96  }
  0x4d   :  { %v100_v19 = vsel %vm88_vm2, %v75_v15, %v76_v16  ;;  %v99_v26 = vsel %vm88_vm2, %v76_v16, %v77_v22  ;;  %v82_v13 = vrot.slane %v2448_v28, 1 }
  0x4e   :  { %v427_v24 = vmul.f32 %v1957_v20, %v100_v19 }
  0x4f   :  { %453 = vperm.xlu0 %2095, %v2295_v30   ;;  %v47_v30 = vrot.slane %v2448_v28, 7  ;;  %v94_v16 = vsel %vm88_vm2, %v81_v33, %v82_v13 }
  0x50   :  { %938 = vperm.xlu1 %2080, %v439_v6  }
  0x51   :  { %v61_v2 = vsel %vm55_vm0, %v46_v37, %v47_v30  ;;  %v2592_v37 = vld [vmem:[%s3510_s1 + $0x4] ss:$0 sm:$0xff] }
  0x53   :  { %660 = vperm.xlu0 %2095, %v2300_v31  }
  0x54   :  { %2081 = vset.pattern.permute.xlu1 %v2176_v7 }
  0x55   :  { %773 = vperm.xlu1 %2081, %v2300_v31   ;;  %v2464_v31 = vsel %vm55_vm0, %v47_v30, %v48_v53  ;;  %v2581_v30 = vld [vmem:[%s3510_s1 + $0x2] ss:$0 sm:$0xff] }
  0x57   :  { %868 = vperm.xlu0 %2095, %v102_v11  }
  0x59   :  { %2082 = vset.pattern.permute.xlu1 %v2175_v4 }
  0x5a   :  { %665 = vperm.xlu1 %2082, %v2305_v32   ;;  %v80_v32 = vrot.slane %v2328_v41, 1 }
  0x5b   :  { %670 = vperm.xlu0 %2095, %v2375_v58  }
  0x5c   :  { %v95_v35 = vsel %vm88_vm2, %v80_v32, %v81_v33  ;;  %v96_v55 = vsel %vm88_vm2, %v79_v23, %v80_v32 }
  0x5e   :  { %873 = vperm.xlu1 %2082, %v101_v18  }
  0x5f   :  { %478 = vperm.xlu0 %2095, %v64_v21  }
  0x62   :  { %878 = vperm.xlu1 %2082, %v427_v24   ;;  %v115_v24 = vadd.s32 88, %v2238_v10 }
  0x63   :  { %883 = vperm.xlu0 %2095, %v99_v26   ;;  %v2568_v26 = vld [vmem:[%s3510_s1 + $0x1] ss:$0 sm:$0xff] }
  0x64   :  { %v201_v34 = vand.u32 31, %v115_v24 }
  0x66   :  { %2083 = vset.pattern.permute.xlu1 %v2176_v7  ;;  %vm2609_vm9 = vcmp.le.s32.totalorder %v201_v34, 30 }
  0x67   :  { %675 = vperm.xlu0 %2095, %v2420_v14   ;;  %781 = vperm.xlu1 %2083, %v2375_v58   ;;  %v431_v58 = vmul.f32 %v1958_v56, %v96_v55 }
  0x6b   :  { %483 = vperm.xlu0 %2095, %v2345_v49   ;;  %2084 = vset.pattern.permute.xlu1 %v2175_v4 }
  0x6c   :  { %473 = vperm.xlu1 %2084, %v65_v27  }
  0x6f   :  { %690 = vperm.xlu0 %2095, %v2455_v29  }
  0x70   :  { %2085 = vset.pattern.permute.xlu1 %v2176_v7 }
  0x71   :  { %567 = vperm.xlu1 %2085, %v65_v27  }
  0x73   :  { %498 = vperm.xlu0 %2095, %v2464_v31  }
  0x75   :  { %571 = vperm.xlu1 %2085, %v64_v21  }
  0x77   :  { %903 = vperm.xlu0 %2095, %v95_v35  }
  0x79   :  { %2086 = vset.pattern.permute.xlu1 %v2175_v4 }
  0x7a   :  { %888 = vperm.xlu1 %2086, %v98_v36  }
  0x7b   :  { %695 = vperm.xlu0 %2095, %v2448_v28  }
  0x7e   :  { %680 = vperm.xlu1 %2086, %v2323_v40  }
  0x7f   :  { %503 = vperm.xlu0 %2095, %v2370_v57  }
  0x81   :  { %v2486_v42 = vpop.permute.xlu1 %513 }
  0x82   :  { %488 = vperm.xlu1 %2086, %v62_v38  }
  0x83   :  { %710 = vperm.xlu0 %2095, %v2216_v0  }
  0x85   :  { %v2495_v45 = vpop.permute.xlu1 %518  ;;  %v544_v46 = vpop.permute.xlu0 %543 }
  0x86   :  { %2087 = vset.pattern.permute.xlu1 %v2176_v7  ;;  %v610_v27 = vmul.f32 %v2568_v26, %v544_v46 }
  0x87   :  { %579 = vperm.xlu1 %2087, %v62_v38   ;;  %928 = vperm.xlu0 %2095, %v90_v43   ;;  %v83_v38 = vrot.slane %v2351_v50, 1 }
  0x89   :  { %v2501_v47 = vpop.permute.xlu0 %603 }
  0x8a   :  { %v2503_v48 = vpop.permute.xlu1 %547  ;;  %v625_v46 = vmul.f32 %v2568_v26, %v2501_v47 }
  0x8b   :  { %785 = vperm.xlu1 %2087, %v2420_v14  }
  0x8d   :  { %v2507_v49 = vpop.permute.xlu0 %551 }
  0x8e   :  { %v600_v52 = vpop.permute.xlu1 %599 }
  0x8f   :  { %2088 = vset.pattern.permute.xlu1 %v2175_v4  ;;  %v624_v35 = vmul.f32 %v2568_v26, %v600_v52  ;;  %v84_v52 = vrot.slane %v2356_v51, 1 }
  0x90   :  { %685 = vperm.xlu1 %2088, %v2328_v41  }
  0x91   :  { %v2512_v53 = vpop.permute.xlu0 %765 }
  0x93   :  { %v646_v57 = vpop.permute.xlu1 %645 }
  0x94   :  { %893 = vperm.xlu1 %2088, %v97_v54  }
  0x95   :  { %v2519_v40 = vpop.permute.xlu0 %821 }
  0x96   :  { %v843_v34 = vmul.f32 %v2602_v1, %v2519_v40 }
  0x97   :  { %v716_v59 = vpop.permute.xlu1 %715 }
  0x98   :  { %898 = vperm.xlu1 %2088, %v431_v58  }
  0x99   :  { %v2521_v61 = vpop.permute.xlu0 %559 }
  0x9b   :  { %v721_v41 = vpop.permute.xlu1 %720 }
  0x9c   :  { %2089 = vset.pattern.permute.xlu1 %v2176_v7 }
  0x9d   :  { %797 = vperm.xlu1 %2089, %v2455_v29   ;;  %v2525_v62 = vpop.permute.xlu0 %769  ;;  %v2576_v29 = vld [vmem:[%s3510_s1] ss:$0 sm:$0xff] }
  0x9e   :  { %v539_v43 = vmul.f32 %v2576_v29, %v2486_v42  ;;  %v540_v54 = vmul.f32 %v2576_v29, %v2495_v45 }
  0x9f   :  { %v2527_v63 = vpop.permute.xlu1 %458 }
  0xa0   :  { %v640_v47 = vadd.f32 %v624_v35, %v539_v43 }
  0xa1   :  { %2090 = vset.pattern.permute.xlu1 %v2175_v4  ;;  %v2532_v3 = vpop.permute.xlu0 %777 }
  0xa2   :  { %493 = vperm.xlu1 %2090, %v61_v2  }
  0xa4   :  { %v2534_v5 = vpop.permute.xlu1 %555 }
  0xa5   :  { %v2536_v6 = vpop.permute.xlu0 %575 }
  0xa6   :  { %2091 = vset.pattern.permute.xlu1 %v2176_v7 }
  0xa7   :  { %583 = vperm.xlu1 %2091, %v61_v2  }
  0xa8   :  { %v762_v8 = vpop.permute.xlu1 %761 }
  0xa9   :  { %v2539_v11 = vpop.permute.xlu0 %789 }
  0xab   :  { %587 = vperm.xlu1 %2091, %v2464_v31  }
  0xac   :  { %v818_v14 = vpop.permute.xlu1 %817 }
  0xad   :  { %v2543_v15 = vpop.permute.xlu0 %793  ;;  %v842_v58 = vmul.f32 %v2602_v1, %v818_v14  ;;  %v92_v14 = vsel %vm88_vm2, %v83_v38, %v84_v52 }
  0xaf   :  { %2092 = vset.pattern.permute.xlu1 %v2175_v4 }
  0xb0   :  { %908 = vperm.xlu1 %2092, %v94_v16   ;;  %v641_v16 = vadd.f32 %v625_v46, %v540_v54  ;;  %v611_v54 = vmul.f32 %v2568_v26, %v2503_v48 }
  0xb1   :  { %v2550_v17 = vpop.permute.xlu1 %655  ;;  %v2552_v18 = vpop.permute.xlu0 %591 }
  0xb4   :  { %700 = vperm.xlu1 %2092, %v2351_v50   ;;  %v828_v50 = vmul.f32 %v2602_v1, %v762_v8  ;;  %v2620_v8 = vld [vmem:[%s3510_s1 + $0x5] ss:$0 sm:$0xff] }
  0xb5   :  { %v2555_v19 = vpop.permute.xlu1 %463  ;;  %v2557_v20 = vpop.permute.xlu0 %805 }
  0xb8   :  { %508 = vperm.xlu1 %2092, %v2385_v60  }
  0xb9   :  { %v2560_v21 = vpop.permute.xlu1 %468  ;;  %v2562_v22 = vpop.permute.xlu0 %809 }
  0xbc   :  { %2093 = vset.pattern.permute.xlu1 %v2176_v7 }
  0xbd   :  { %595 = vperm.xlu1 %2093, %v2385_v60   ;;  %v727_v60 = vmul.f32 %v2581_v30, %v646_v57  ;;  %v742_v57 = vmul.f32 %v2581_v30, %v721_v41  ;;  %v93_v41 = vsel %vm88_vm2, %v82_v13, %v83_v38 }
  0xbe   :  { %v444_v31 = vpop.permute.xlu0 %443  ;;  %v2583_v32 = vpop.permute.xlu1 %563 }
  0xbf   :  { %v525_v33 = vmul.f32 %v2576_v29, %v444_v31  ;;  %v758_v35 = vadd.f32 %v742_v57, %v641_v16  ;;  %v612_v57 = vmul.f32 %v2568_v26, %v2507_v49  ;;  %v829_v16 = vmul.f32 %v2602_v1, %v2512_v53 }
  0xc0   :  { %v729_v53 = vmul.f32 %v2581_v30, %v2550_v17  ;;  %v830_v17 = vmul.f32 %v2602_v1, %v2525_v62 }
  0xc1   :  { %v626_v36 = vadd.f32 %v610_v27, %v525_v33  ;;  %801 = vperm.xlu1 %2093, %v2448_v28   ;;  %v741_v28 = vmul.f32 %v2581_v30, %v716_v59  ;;  %v1959_v33 = vsel %vm2609_vm9, 1.0, %v3515_v12  ;;  %v859_v56 = vadd.f32 %v843_v34, %v758_v35 }
  0xc2   :  { %v449_v23 = vpop.permute.xlu0 %448  ;;  %v435_v38 = vmul.f32 %v1959_v33, %v92_v14  ;;  %v613_v34 = vmul.f32 %v2568_v26, %v2534_v5  ;;  %v614_v35 = vmul.f32 %v2568_v26, %v2521_v61  ;;  %v91_v5 = vsel %vm88_vm2, %v84_v52, %v85_v39 }
  0xc3   :  { %v743_v55 = vadd.f32 %v727_v60, %v626_v36  ;;  %v864_v42 = vpop.permute.xlu1 %863  ;;  %v757_v45 = vadd.f32 %v741_v28, %v640_v47  ;;  %v526_v43 = vmul.f32 %v2576_v29, %v449_v23 }
  0xc4   :  { %v945_v59 = vmul.f32 %v2592_v37, %v864_v42 }
  0xc5   :  { %v844_v2 = vadd.f32 %v828_v50, %v743_v55  ;;  %2094 = vset.pattern.permute.xlu1 %v2175_v4  ;;  %v858_v60 = vadd.f32 %v842_v58, %v757_v45  ;;  %v627_v23 = vadd.f32 %v611_v54, %v526_v43  ;;  %v528_v43 = vmul.f32 %v2576_v29, %v2527_v63 }
  0xc6   :  { %v651_v24 = vpop.permute.xlu0 %650  ;;  %705 = vperm.xlu1 %2094, %v2356_v51  }
  0xc7   :  { %v961_v27 = vadd.f32 %v945_v59, %v844_v2  ;;  %v934_v31 = vpop.permute.xlu1 %933  ;;  %v728_v55 = vmul.f32 %v2581_v30, %v651_v24  ;;  %v629_v51 = vadd.f32 %v613_v34, %v528_v43  ;;  %v1428_v43 = vld [vmem:[%s3511_s2 + $0x50] sm:$0xff] }
  0xc8   :  { %v959_v36 = vmul.f32 %v2592_v37, %v934_v31 }
  0xc9   :  { %v982_v13 = vadd.f32 %v2620_v8, %v961_v27  ;;  %v744_v45 = vadd.f32 %v728_v55, %v627_v23  ;;  %v832_v55 = vmul.f32 %v2602_v1, %v2532_v3  ;;  %v1432_v3 = vld [vmem:[%s3511_s2 + $0x70] sm:$0xff] }
  0xca   :  { %v975_v46 = vadd.f32 %v959_v36, %v858_v60  ;;  %v454_v28 = vpop.permute.xlu0 %453  ;;  %913 = vperm.xlu1 %2094, %v93_v41   ;;  %v529_v60 = vmul.f32 %v2576_v29, %v2555_v19 }
  0xcb   :  { %v998_v50 = vmax.f32 %v982_v13, 0.0  ;;  %v939_v40 = vpop.permute.xlu1 %938  ;;  %v527_v59 = vmul.f32 %v2576_v29, %v454_v28  ;;  %v845_v49 = vadd.f32 %v829_v16, %v744_v45 }
  0xcc   :  { %v996_v42 = vadd.f32 %v2620_v8, %v975_v46  ;;  %v960_v47 = vmul.f32 %v2592_v37, %v939_v40  ;;  %v630_v39 = vadd.f32 %v614_v35, %v529_v60  ;;  %v1429_v35 = vld [vmem:[%s3511_s2 + $0x58] sm:$0xff]  ;;  %v1123_v60 = vand.u32 15, %v2499_v44 }
  0xcd   :  { %1015 = vst.msk [vmem:[#allocation2] sm:$0xff] %vm1014_vm10, %v998_v50  ;;  %v628_v31 = vadd.f32 %v612_v57, %v527_v59 }
  0xce   :  { %v1012_v58 = vmax.f32 %v996_v42, 0.0  ;;  %v976_v2 = vadd.f32 %v960_v47, %v859_v56  ;;  %v661_v48 = vpop.permute.xlu0 %660  ;;  %918 = vperm.xlu1 %2094, %v435_v38   ;;  %v1433_v42 = vld [vmem:[%s3511_s2 + $0x78] sm:$0xff]  ;;  %vm2730_vm13 = vcmp.lt.s32.totalorder %v1123_v60, 14 }
  0xcf   :  { %v745_v13 = vadd.f32 %v729_v53, %v628_v31  ;;  %v730_v61 = vmul.f32 %v2581_v30, %v661_v48  ;;  %1468 = vmatpush1.msra.mxu0 %v1433_v42  ;;  %v1431_v48 = vld [vmem:[%s3511_s2 + $0x68] sm:$0xff] }
  0xd0   :  { %1029 = vst.msk [vmem:[#allocation2 + $0x70] sm:$0xff] %vm1014_vm10, %v1012_v58  ;;  %v997_v24 = vadd.f32 %v2620_v8, %v976_v2  ;;  %v774_v27 = vpop.permute.xlu1 %773  ;;  %1469 = vmatprep.subr.mxu0 %v3515_v12 }
  0xd1   :  { %v746_v62 = vadd.f32 %v730_v61, %v629_v51  ;;  %v831_v38 = vmul.f32 %v2602_v1, %v774_v27  ;;  %v846_v63 = vadd.f32 %v830_v17, %v745_v13  ;;  %1470 = vmatpush1.msra.mxu0 %v1432_v3  ;;  %v530_v3 = vmul.f32 %v2576_v29, %v2560_v21  ;;  %v1423_v21 = vld [vmem:[%s3511_s2 + $0x28] sm:$0xff] }
  0xd2   :  { %v1013_v41 = vmax.f32 %v997_v24, 0.0  ;;  %v869_v14 = vpop.permute.xlu0 %868  ;;  %2096 = vset.pattern.permute.xlu1 %v2176_v7  ;;  %1471 = vmatprep.subr.mxu0 %v3515_v12 }
  0xd3   :  { %v946_v33 = vmul.f32 %v2592_v37, %v869_v14  ;;  %813 = vperm.xlu1 %2096, %v2216_v0   ;;  %v847_v23 = vadd.f32 %v831_v38, %v746_v62  ;;  %1472 = vmatpush1.msra.mxu0 %v1431_v48  ;;  %v1430_v14 = vld [vmem:[%s3511_s2 + $0x60] sm:$0xff]  ;;  %v1427_v38 = vld [vmem:[%s3511_s2 + $0x48] sm:$0xff]  ;;  %v1436_v48 = vld [vmem:[%s3511_s2 + $0x90] sm:$0xff] }
  0xd4   :  { %1030 = vst.msk [vmem:[#allocation2 + $0x78] sm:$0xff] %vm1014_vm10, %v1013_v41  ;;  %1473 = vmatprep.subr.mxu0 %v3515_v12 }
  0xd5   :  { %v962_v7 = vadd.f32 %v946_v33, %v845_v49  ;;  %v666_v36 = vpop.permute.xlu1 %665  ;;  %1474 = vmatpush1.msra.mxu0 %v1430_v14 }
  0xd6   :  { %v2673_v46 = vpop.permute.xlu0 %670  ;;  %v731_v0 = vmul.f32 %v2581_v30, %v666_v36  ;;  %1475 = vmatprep.subr.mxu0 %v3515_v12 }
  0xd7   :  { %v983_v19 = vadd.f32 %v2620_v8, %v962_v7  ;;  %2097 = vset.pattern.permute.xlu1 %v2175_v4  ;;  %1476 = vmatpush1.msra.mxu0 %v1429_v35  ;;  %v1422_v35 = vld [vmem:[%s3511_s2 + $0x20] sm:$0xff] }
  0xd8   :  { %923 = vperm.xlu1 %2097, %v91_v5   ;;  %v747_v40 = vadd.f32 %v731_v0, %v630_v39  ;;  %v1074_v5 = vand.u32 15, %v2238_v10  ;;  %1477 = vmatprep.subr.mxu0 %v3515_v12 }
  0xd9   :  { %v999_v52 = vmax.f32 %v983_v19, 0.0  ;;  %v874_v28 = vpop.permute.xlu1 %873  ;;  %1478 = vmatpush1.msra.mxu0 %v1428_v43 }
  0xda   :  { %v947_v54 = vmul.f32 %v2592_v37, %v874_v28  ;;  %v2680_v50 = vpop.permute.xlu0 %478  ;;  %v848_v16 = vadd.f32 %v832_v55, %v747_v40  ;;  %vm2738_vm14 = vcmp.ge.s32.totalorder %v1074_v5, 2  ;;  %1479 = vmatprep.subr.mxu0 %v3515_v12  ;;  %v1426_v55 = vld [vmem:[%s3511_s2 + $0x40] sm:$0xff]  ;;  %vm2790_vm15 = vcmp.ge.s32.totalorder %v1074_v5, 1  ;;  %v1421_v5 = vld [vmem:[%s3511_s2 + $0x18] sm:$0xff] }
  0xdb   :  { %1016 = vst.msk [vmem:[#allocation2 + $0x8] sm:$0xff] %vm1014_vm10, %v999_v52  ;;  %v1045_v47 = vld [vmem:[#allocation2 + $0x70] ss:$2 sm:$0xff]  ;;  %v1061_v2 = vld [vmem:[#allocation2 + $0x71] ss:$2 sm:$0xff]  ;;  %1480 = vmatpush1.msra.mxu0 %v1427_v38 }
  0xdc   :  { %v963_v4 = vadd.f32 %v947_v54, %v846_v63  ;;  %v2699_v41 = vmax.f32 %v1045_v47, %v1061_v2  ;;  %1481 = vmatprep.subr.mxu0 %v3515_v12  ;;  %v615_v47 = vmul.f32 %v2568_v26, %v2583_v32  ;;  %v1424_v2 = vld [vmem:[%s3511_s2 + $0x30] sm:$0xff] }
  0xdd   :  { %v879_v56 = vpop.permute.xlu1 %878  ;;  %1482 = vmatpush1.msra.mxu0 %v1426_v55 }
  0xde   :  { %v984_v57 = vadd.f32 %v2620_v8, %v963_v4  ;;  %v948_v58 = vmul.f32 %v2592_v37, %v879_v56  ;;  %v884_v59 = vpop.permute.xlu0 %883  ;;  %v3518_v19 = vrot.slane %v2699_v41, 2  ;;  %v3517_v52 = vrot.slane %v2699_v41, 6  ;;  %1483 = vmatprep.subr.mxu0 %v3515_v12  ;;  %v1425_v56 = vld [vmem:[%s3511_s2 + $0x38] sm:$0xff] }
  0xdf   :  { %v949_v45 = vmul.f32 %v2592_v37, %v884_v59  ;;  %1484 = vmatpush1.msra.mxu0 %v1425_v56 }
  0xe0   :  { %v1000_v24 = vmax.f32 %v984_v57, 0.0  ;;  %v964_v27 = vadd.f32 %v948_v58, %v847_v23  ;;  %v1206_v58 = vrot.slane %v2699_v41, 7  ;;  %1485 = vmatprep.subr.mxu0 %v3515_v12 }
  0xe1   :  { %v965_v31 = vadd.f32 %v949_v45, %v848_v16  ;;  %1486 = vmatpush1.msra.mxu0 %v1424_v2  ;;  %v732_v16 = vmul.f32 %v2581_v30, %v2673_v46  ;;  %v1437_v2 = vld [vmem:[%s3511_s2 + $0x98] sm:$0xff] }
  0xe2   :  { %1017 = vst.msk [vmem:[#allocation2 + $0x10] sm:$0xff] %vm1014_vm10, %v1000_v24  ;;  %v985_v49 = vadd.f32 %v2620_v8, %v964_v27  ;;  %v2706_v33 = vpop.permute.xlu1 %781  ;;  %v1031_v34 = vld [vmem:[#allocation2] ss:$2 sm:$0xff]  ;;  %v1047_v53 = vld [vmem:[#allocation2 + $0x1] ss:$2 sm:$0xff]  ;;  %1487 = vmatprep.subr.mxu0 %v3515_v12 }
  0xe3   :  { %v986_v7 = vadd.f32 %v2620_v8, %v965_v31  ;;  %v2714_v36 = vmax.f32 %v1031_v34, %v1047_v53  ;;  %v631_v31 = vadd.f32 %v615_v47, %v530_v3  ;;  %1488 = vmatpush1.msra.mxu0 %v1423_v21  ;;  %v1418_v47 = vld [vmem:[%s3511_s2] sm:$0xff]  ;;  %v105_v21 = vadd.s32 8, %v2238_v10 }
  0xe4   :  { %v1001_v17 = vmax.f32 %v985_v49, 0.0  ;;  %v833_v49 = vmul.f32 %v2602_v1, %v2706_v33  ;;  %1489 = vmatprep.subr.mxu0 %v3515_v12 }
  0xe5   :  { %v1002_v13 = vmax.f32 %v986_v7, 0.0  ;;  %v1263_v61 = vrot.slane %v2714_v36, 2  ;;  %v1166_v0 = vrot.slane %v2714_v36, 6  ;;  %v1199_v4 = vrot.slane %v2714_v36, 7  ;;  %1490 = vmatpush1.msra.mxu0 %v1422_v35 }
  0xe6   :  { %1018 = vst.msk [vmem:[#allocation2 + $0x18] sm:$0xff] %vm1014_vm10, %v1001_v17  ;;  %v748_v7 = vadd.f32 %v732_v16, %v631_v31  ;;  %1491 = vmatprep.subr.mxu0 %v3515_v12  ;;  %v1420_v17 = vld [vmem:[%s3511_s2 + $0x10] sm:$0xff]  ;;  %v2863_v31 = vadd.s32 16, %v2238_v10  ;;  %v1081_v35 = vand.u32 15, %v105_v21 }
  0xe7   :  { %1019 = vst.msk [vmem:[#allocation2 + $0x20] sm:$0xff] %vm1014_vm10, %v1002_v13  ;;  %v2735_v39 = vpop.permute.xlu1 %473  ;;  %v2746_v62 = vsel %vm1271_vm11, %v3518_v19, %v1263_v61  ;;  %v2756_v63 = vsel %vm1174_vm12, %v3517_v52, %v1166_v0  ;;  %v1214_v32 = vsel %vm55_vm0, %v1206_v58, %v1199_v4  ;;  %v676_v13 = vpop.permute.xlu0 %675  ;;  %1492 = vmatpush1.msra.mxu0 %v1421_v5 }
  0xe8   :  { %v1223_v53 = vsel %vm2790_vm15, %v1214_v32, 0.0  ;;  %v849_v38 = vadd.f32 %v833_v49, %v748_v7  ;;  %1493 = vmatprep.subr.mxu0 %v3515_v12  ;;  %vm2884_vm1 = vcmp.lt.s32.totalorder %v1081_v35, 15  ;;  %vm2888_vm3 = vcmp.lt.s32.totalorder %v1081_v35, 14 }
  0xe9   :  { %1494 = vmatpush1.msra.mxu0 %v1420_v17 }
  0xea   :  { %1495 = vmatprep.subr.mxu0 %v3515_v12 }
  0xeb   :  { %v484_v3 = vpop.permute.xlu0 %483 }
  0xec   :  { %v2769_v42 = vpop.permute.xlu1 %567  ;;  %v533_v7 = vmul.f32 %v2576_v29, %v484_v3  ;;  %v532_v3 = vmul.f32 %v2576_v29, %v2680_v50 }
  0xed   :  { %v1033_v23 = vld [vmem:[#allocation2 + $0x10] ss:$2 sm:$0xff]  ;;  %v1049_v57 = vld [vmem:[#allocation2 + $0x11] ss:$2 sm:$0xff]  ;;  %v616_v5 = vmul.f32 %v2568_v26, %v2769_v42  ;;  %v531_v42 = vmul.f32 %v2576_v29, %v2735_v39  ;;  %v733_v39 = vmul.f32 %v2581_v30, %v676_v13 }
  0xee   :  { %v2778_v59 = vmax.f32 %v1033_v23, %v1049_v57 }
  0xef   :  { %v2866_v49 = vpop.permute.xlu0 %690 }
  0xf0   :  { %v2796_v45 = vpop.permute.xlu1 %571  ;;  %v1264_v24 = vrot.slane %v2778_v59, 2  ;;  %v1200_v27 = vrot.slane %v2778_v59, 7  ;;  %v1167_v14 = vrot.slane %v2778_v59, 6 }
  0xf1   :  { %v617_v35 = vmul.f32 %v2568_v26, %v2796_v45 }
  0xf2   :  { %v1278_v46 = vsel %vm1271_vm11, %v1263_v61, %v1264_v24  ;;  %v1213_v34 = vsel %vm55_vm0, %v1199_v4, %v1200_v27  ;;  %v2833_v43 = vsel %vm1174_vm12, %v1166_v0, %v1167_v14  ;;  %v2103_v4 = vpack.i.bf16 %v2778_v59, %v2714_v36  ;;  %v1419_v0 = vld [vmem:[%s3511_s2 + $0x8] sm:$0xff] }
  0xf3   :  { %1968 = vmatprep.mubr.msk.f32.mxu0 %vm1014_vm10, %v1278_v46  ;;  %v2098_v33 = vpack.i.bf16 %v1213_v34, %v1223_v53  ;;  %1496 = vmatpush1.msra.mxu0 %v1419_v0  ;;  %v1435_v46 = vld [vmem:[%s3511_s2 + $0x88] sm:$0xff]  ;;  %v1434_v34 = vld [vmem:[%s3511_s2 + $0x80] sm:$0xff]  ;;  %v618_v0 = vmul.f32 %v2568_v26, %v2536_v6 }
  0xf4   :  { %1497 = vmatprep.subr.mxu0 %v3515_v12 }
  0xf5   :  { %2099 = vrot.lane.b32.xlu1 %v2098_v33, %s2178_s11  ;;  %v889_v61 = vpop.permute.xlu1 %888  ;;  %1498 = vmatpush1.msra.mxu0 %v1418_v47  ;;  %v1088_v33 = vand.u32 15, %v2863_v31  ;;  %v2896_v47 = vpop.permute.xlu0 %498  ;;  %v634_v21 = vadd.f32 %v618_v0, %v533_v7 }
  0xf6   :  { %v950_v55 = vmul.f32 %v2592_v37, %v889_v61  ;;  %1523 = vmatprep.subr.mxu0 %v3515_v12 }
  0xf7   :  { %1524 = vmatpush2.msra.mxu0 %v1437_v2  ;;  %vm2901_vm4 = vcmp.ge.s32.totalorder %v1088_v33, 2  ;;  %vm1217_vm5 = vcmp.ge.s32.totalorder %v1088_v33, 1 }
  0xf8   :  { %v966_v56 = vadd.f32 %v950_v55, %v849_v38  ;;  %1525 = vmatprep.subr.mxu0 %v3515_v12 }
  0xf9   :  { %2104 = vrot.lane.b32.xlu1 %v2103_v4, %s2179_s16  ;;  %v681_v23 = vpop.permute.xlu1 %680  ;;  %1526 = vmatpush2.msra.mxu0 %v1436_v48  ;;  %v904_v4 = vpop.permute.xlu0 %903 }
  0xfa   :  { %v987_v57 = vadd.f32 %v2620_v8, %v966_v56  ;;  %1527 = vmatprep.subr.mxu0 %v3515_v12  ;;  %v953_v54 = vmul.f32 %v2592_v37, %v904_v4 }
  0xfb   :  { %1528 = vmatpush2.msra.mxu0 %v1435_v46  ;;  %v632_v46 = vadd.f32 %v616_v5, %v531_v42 }
  0xfc   :  { %v1003_v32 = vmax.f32 %v987_v57, 0.0  ;;  %1529 = vmatprep.subr.mxu0 %v3515_v12  ;;  %v1232_v57 = vrot.slane %v2778_v59, 1 }
  0xfd   :  { %v2857_v16 = vpop.permute.xlu1 %488  ;;  %1530 = vmatpush2.msra.mxu0 %v1434_v34  ;;  %v1231_v34 = vrot.slane %v2714_v36, 1  ;;  %v749_v52 = vadd.f32 %v733_v39, %v632_v46  ;;  %v3543_v36 = vsel %vm2738_vm14, %v2756_v63, 0.0 }
  0xfe   :  { %1020 = vst.msk [vmem:[#allocation2 + $0x28] sm:$0xff] %vm1014_vm10, %v1003_v32  ;;  %2054 = vmatprep.subr.mxu0 %v3515_v12 }
  0xff   :  { %v1245_v7 = vsel %vm88_vm2, %v1231_v34, %v1232_v57 }
 0x102   :  { %v2874_v53 = vpop.permute.xlu1 %579 }
 0x105   :  { %v1035_v17 = vld [vmem:[#allocation2 + $0x20] ss:$2 sm:$0xff]  ;;  %v1051_v61 = vld [vmem:[#allocation2 + $0x21] ss:$2 sm:$0xff] }
 0x106   :  { %v786_v38 = vpop.permute.xlu1 %785  ;;  %v2882_v55 = vmax.f32 %v1035_v17, %v1051_v61 }
 0x107   :  { %v834_v0 = vmul.f32 %v2602_v1, %v786_v38 }
 0x108   :  { %v1233_v32 = vrot.slane %v2882_v55, 1  ;;  %v1265_v6 = vrot.slane %v2882_v55, 2  ;;  %v1168_v48 = vrot.slane %v2882_v55, 6 }
 0x10a   :  { %v1244_v50 = vsel %vm88_vm2, %v1232_v57, %v1233_v32  ;;  %v2924_v17 = vsel %vm1271_vm11, %v1264_v24, %v1265_v6  ;;  %v2932_v45 = vsel %vm1174_vm12, %v1167_v14, %v1168_v48  ;;  %v734_v14 = vmul.f32 %v2581_v30, %v681_v23 }
 0x10b   :  { %v686_v13 = vpop.permute.xlu1 %685  ;;  %v1256_v5 = vsel %vm2884_vm1, %v1244_v50, 0.0  ;;  %v836_v57 = vmul.f32 %v2602_v1, %v2543_v15  ;;  %v633_v50 = vadd.f32 %v617_v35, %v532_v3  ;;  %v850_v23 = vadd.f32 %v834_v0, %v749_v52 }
 0x10c   :  { %v735_v42 = vmul.f32 %v2581_v30, %v686_v13  ;;  %v2108_v12 = vpack.i.bf16 %v1256_v5, %v1245_v7  ;;  %v835_v13 = vmul.f32 %v2602_v1, %v2539_v11  ;;  %v3545_v56 = vsel %vm2901_vm4, %v2932_v45, 0.0 }
 0x10d   :  { %v750_v24 = vadd.f32 %v734_v14, %v633_v50  ;;  %v736_v50 = vmul.f32 %v2581_v30, %v2866_v49 }
 0x10e   :  { %v751_v19 = vadd.f32 %v735_v42, %v634_v21  ;;  %2109 = vrot.lane.b32.xlu0 %v2108_v12, %s2180_s0 }
 0x10f   :  { %v894_v61 = vpop.permute.xlu1 %893  ;;  %v851_v21 = vadd.f32 %v835_v13, %v750_v24  ;;  %v619_v24 = vmul.f32 %v2568_v26, %v2874_v53 }
 0x110   :  { %v852_v40 = vadd.f32 %v836_v57, %v751_v19  ;;  %v951_v38 = vmul.f32 %v2592_v37, %v894_v61  ;;  %v534_v57 = vmul.f32 %v2576_v29, %v2857_v16 }
 0x112   :  { %v969_v7 = vadd.f32 %v953_v54, %v852_v40  ;;  %v967_v15 = vadd.f32 %v951_v38, %v850_v23  ;;  %v1201_v40 = vrot.slane %v2882_v55, 7  ;;  %v635_v53 = vadd.f32 %v619_v24, %v534_v57 }
 0x113   :  { %v899_v5 = vpop.permute.xlu1 %898  ;;  %v1102_v24 = vand.u32 15, %v2274_v25 }
 0x114   :  { %v990_v3 = vadd.f32 %v2620_v8, %v969_v7  ;;  %v988_v39 = vadd.f32 %v2620_v8, %v967_v15  ;;  %v952_v46 = vmul.f32 %v2592_v37, %v899_v5  ;;  %v1212_v23 = vsel %vm55_vm0, %v1200_v27, %v1201_v40 }
 0x115   :  { %v1225_v27 = vsel %vm1217_vm5, %v1212_v23, 0.0  ;;  %v622_v23 = vmul.f32 %v2568_v26, %v2552_v18  ;;  %vm3028_vm8 = vcmp.ge.s32.totalorder %v1102_v24, 2  ;;  %vm1219_vm9 = vcmp.ge.s32.totalorder %v1102_v24, 1 }
 0x116   :  { %v1006_v12 = vmax.f32 %v990_v3, 0.0  ;;  %v1004_v35 = vmax.f32 %v988_v39, 0.0  ;;  %v968_v14 = vadd.f32 %v952_v46, %v851_v21  ;;  %v752_v3 = vadd.f32 %v736_v50, %v635_v53 }
 0x118   :  { %1023 = vst.msk [vmem:[#allocation2 + $0x40] sm:$0xff] %vm1014_vm10, %v1006_v12  ;;  %1021 = vst.msk [vmem:[#allocation2 + $0x30] sm:$0xff] %vm1014_vm10, %v1004_v35  ;;  %v989_v19 = vadd.f32 %v2620_v8, %v968_v14  ;;  %v798_v11 = vpop.permute.xlu1 %797 }
 0x119   :  { %v837_v49 = vmul.f32 %v2602_v1, %v798_v11 }
 0x11a   :  { %v1005_v52 = vmax.f32 %v989_v19, 0.0 }
 0x11b   :  { %v853_v21 = vadd.f32 %v837_v49, %v752_v3  ;;  %v536_v3 = vmul.f32 %v2576_v29, %v2896_v47 }
 0x11c   :  { %1022 = vst.msk [vmem:[#allocation2 + $0x38] sm:$0xff] %vm1014_vm10, %v1005_v52 }
 0x11d   :  { %v494_v54 = vpop.permute.xlu1 %493 }
 0x11e   :  { %v535_v49 = vmul.f32 %v2576_v29, %v494_v54 }
 0x122   :  { %v584_v61 = vpop.permute.xlu1 %583 }
 0x123   :  { %v1037_v0 = vld [vmem:[#allocation2 + $0x30] ss:$2 sm:$0xff]  ;;  %v1053_v42 = vld [vmem:[#allocation2 + $0x31] ss:$2 sm:$0xff] }
 0x124   :  { %v2968_v4 = vmax.f32 %v1037_v0, %v1053_v42  ;;  %v620_v42 = vmul.f32 %v2568_v26, %v584_v61 }
 0x126   :  { %v588_v38 = vpop.permute.xlu1 %587  ;;  %v2118_v13 = vpack.i.bf16 %v2968_v4, %v2882_v55  ;;  %v1202_v16 = vrot.slane %v2968_v4, 7  ;;  %v1266_v7 = vrot.slane %v2968_v4, 2  ;;  %v1169_v15 = vrot.slane %v2968_v4, 6 }
 0x128   :  { %2119 = vrot.lane.b32.xlu0 %v2118_v13, %s2179_s16  ;;  %v1211_v59 = vsel %vm55_vm0, %v1201_v40, %v1202_v16  ;;  %v2993_v31 = vsel %vm1271_vm11, %v1265_v6, %v1266_v7  ;;  %v2999_v5 = vsel %vm1174_vm12, %v1168_v48, %v1169_v15  ;;  %v696_v6 = vpop.permute.xlu0 %695  ;;  %v1095_v48 = vand.u32 15, %v2409_v9 }
 0x129   :  { %v2113_v33 = vpack.i.bf16 %v1211_v59, %v1225_v27  ;;  %v1234_v59 = vrot.slane %v2968_v4, 1 }
 0x12a   :  { %vm3015_vm6 = vcmp.lt.s32.totalorder %v1095_v48, 15  ;;  %vm3019_vm7 = vcmp.lt.s32.totalorder %v1095_v48, 14 }
 0x12b   :  { %2114 = vrot.lane.b32.xlu1 %v2113_v33, %s2178_s11  ;;  %v909_v39 = vpop.permute.xlu1 %908 }
 0x12c   :  { %v954_v46 = vmul.f32 %v2592_v37, %v909_v39  ;;  %v504_v52 = vpop.permute.xlu0 %503  ;;  %v737_v39 = vmul.f32 %v2581_v30, %v696_v6 }
 0x12d   :  { %v537_v0 = vmul.f32 %v2576_v29, %v504_v52 }
 0x12e   :  { %v970_v12 = vadd.f32 %v954_v46, %v853_v21  ;;  %v636_v46 = vadd.f32 %v620_v42, %v535_v49 }
 0x12f   :  { %v701_v35 = vpop.permute.xlu1 %700  ;;  %v638_v21 = vadd.f32 %v622_v23, %v537_v0 }
 0x130   :  { %v991_v14 = vadd.f32 %v2620_v8, %v970_v12  ;;  %v621_v12 = vmul.f32 %v2568_v26, %v588_v38  ;;  %v1243_v38 = vsel %vm88_vm2, %v1233_v32, %v1234_v59  ;;  %v840_v32 = vmul.f32 %v2602_v1, %v2562_v22 }
 0x132   :  { %v1007_v19 = vmax.f32 %v991_v14, 0.0 }
 0x133   :  { %v509_v11 = vpop.permute.xlu1 %508 }
 0x134   :  { %1024 = vst.msk [vmem:[#allocation2 + $0x48] sm:$0xff] %vm1014_vm10, %v1007_v19  ;;  %v538_v22 = vmul.f32 %v2576_v29, %v509_v11 }
 0x138   :  { %v596_v40 = vpop.permute.xlu1 %595 }
 0x13b   :  { %v1039_v57 = vld [vmem:[#allocation2 + $0x40] ss:$2 sm:$0xff]  ;;  %v1055_v50 = vld [vmem:[#allocation2 + $0x41] ss:$2 sm:$0xff] }
 0x13c   :  { %v802_v53 = vpop.permute.xlu1 %801  ;;  %v3011_v13 = vmax.f32 %v1039_v57, %v1055_v50  ;;  %v637_v57 = vadd.f32 %v621_v12, %v536_v3  ;;  %v753_v50 = vadd.f32 %v737_v39, %v636_v46 }
 0x13d   :  { %v838_v0 = vmul.f32 %v2602_v1, %v802_v53  ;;  %v839_v53 = vmul.f32 %v2602_v1, %v2557_v20 }
 0x13e   :  { %v1235_v61 = vrot.slane %v3011_v13, 1  ;;  %v1267_v33 = vrot.slane %v3011_v13, 2  ;;  %v1170_v18 = vrot.slane %v3011_v13, 6 }
 0x13f   :  { %v854_v9 = vadd.f32 %v838_v0, %v753_v50 }
 0x140   :  { %v1242_v14 = vsel %vm88_vm2, %v1234_v59, %v1235_v61  ;;  %v3044_v19 = vsel %vm1271_vm11, %v1266_v7, %v1267_v33  ;;  %v3050_v47 = vsel %vm1174_vm12, %v1169_v15, %v1170_v18  ;;  %v738_v15 = vmul.f32 %v2581_v30, %v701_v35 }
 0x141   :  { %v706_v6 = vpop.permute.xlu1 %705  ;;  %v1258_v52 = vsel %vm3015_vm6, %v1242_v14, 0.0  ;;  %v1291_v7 = vsel %vm3019_vm7, %v3044_v19, 0.0  ;;  %v623_v35 = vmul.f32 %v2568_v26, %v596_v40  ;;  %v3546_v27 = vsel %vm3028_vm8, %v3050_v47, 0.0 }
 0x142   :  { %v739_v55 = vmul.f32 %v2581_v30, %v706_v6  ;;  %v2123_v42 = vpack.i.bf16 %v1258_v52, %v1243_v38  ;;  %v754_v59 = vadd.f32 %v738_v15, %v637_v57  ;;  %v711_v6 = vpop.permute.xlu0 %710 }
 0x143   :  { %v639_v12 = vadd.f32 %v623_v35, %v538_v22  ;;  %v740_v0 = vmul.f32 %v2581_v30, %v711_v6  ;;  %v110_v22 = vadd.s32 48, %v2238_v10 }
 0x144   :  { %v755_v23 = vadd.f32 %v739_v55, %v638_v21  ;;  %2124 = vrot.lane.b32.xlu1 %v2123_v42, %s2180_s0  ;;  %v855_v21 = vadd.f32 %v839_v53, %v754_v59 }
 0x145   :  { %v914_v49 = vpop.permute.xlu1 %913  ;;  %v756_v40 = vadd.f32 %v740_v0, %v639_v12 }
 0x146   :  { %v955_v14 = vmul.f32 %v2592_v37, %v914_v49  ;;  %v856_v48 = vadd.f32 %v840_v32, %v755_v23  ;;  %v929_v55 = vpop.permute.xlu0 %928 }
 0x147   :  { %v958_v42 = vmul.f32 %v2592_v37, %v929_v55 }
 0x148   :  { %v971_v38 = vadd.f32 %v955_v14, %v854_v9  ;;  %v1203_v9 = vrot.slane %v3011_v13, 7 }
 0x149   :  { %v919_v3 = vpop.permute.xlu1 %918 }
 0x14a   :  { %v992_v39 = vadd.f32 %v2620_v8, %v971_v38  ;;  %v956_v46 = vmul.f32 %v2592_v37, %v919_v3  ;;  %v1210_v38 = vsel %vm55_vm0, %v1202_v16, %v1203_v9  ;;  %v109_v16 = vadd.s32 40, %v2238_v10  ;;  %v3259_v10 = vld [vmem:[%s3511_s2 + $0xa0] ss:$0 sm:$0xff] }
 0x14c   :  { %v1008_v52 = vmax.f32 %v992_v39, 0.0  ;;  %v972_v15 = vadd.f32 %v956_v46, %v855_v21  ;;  %v1227_v39 = vsel %vm1219_vm9, %v1210_v38, 0.0  ;;  %v1116_v46 = vand.u32 15, %v110_v22 }
 0x14d   :  { %v1109_v12 = vand.u32 15, %v109_v16  ;;  %vm1254_vm9 = vcmp.lt.s32.totalorder %v1123_v60, 15 }
 0x14e   :  { %1025 = vst.msk [vmem:[#allocation2 + $0x50] sm:$0xff] %vm1014_vm10, %v1008_v52  ;;  %v993_v20 = vadd.f32 %v2620_v8, %v972_v15  ;;  %v814_v26 = vpop.permute.xlu1 %813  ;;  %vm1221_vm15 = vcmp.ge.s32.totalorder %v1116_v46, 1  ;;  %vm3124_vm5 = vcmp.ge.s32.totalorder %v1116_v46, 2 }
 0x14f   :  { %v841_v29 = vmul.f32 %v2602_v1, %v814_v26  ;;  %vm1252_vm1 = vcmp.lt.s32.totalorder %v1109_v12, 15  ;;  %vm3132_vm6 = vcmp.lt.s32.totalorder %v1109_v12, 14 }
 0x150   :  { %v1009_v11 = vmax.f32 %v993_v20, 0.0 }
 0x151   :  { %v857_v32 = vadd.f32 %v841_v29, %v756_v40 }
 0x152   :  { %1026 = vst.msk [vmem:[#allocation2 + $0x58] sm:$0xff] %vm1014_vm10, %v1009_v11  ;;  %v3548_v11 = vrot.slane %v2699_v41, 6 }
 0x153   :  { %v974_v57 = vadd.f32 %v958_v42, %v857_v32  ;;  %v924_v50 = vpop.permute.xlu1 %923 }
 0x154   :  { %v957_v23 = vmul.f32 %v2592_v37, %v924_v50  ;;  %v3547_v50 = vrot.slane %v2699_v41, 2 }
 0x155   :  { %v995_v30 = vadd.f32 %v2620_v8, %v974_v57 }
 0x156   :  { %v973_v49 = vadd.f32 %v957_v23, %v856_v48 }
 0x157   :  { %v1011_v59 = vmax.f32 %v995_v30, 0.0 }
 0x158   :  { %v994_v14 = vadd.f32 %v2620_v8, %v973_v49  ;;  %v1238_v49 = vrot.slane %v2699_v41, 1 }
 0x159   :  { %1028 = vst.msk [vmem:[#allocation2 + $0x68] sm:$0xff] %vm1014_vm10, %v1011_v59  ;;  %v1041_v1 = vld [vmem:[#allocation2 + $0x50] ss:$2 sm:$0xff]  ;;  %v1057_v35 = vld [vmem:[#allocation2 + $0x51] ss:$2 sm:$0xff] }
 0x15a   :  { %v1010_v53 = vmax.f32 %v994_v14, 0.0  ;;  %v1067_v6 = vmax.f32 %v1041_v1, %v1057_v35  ;;  %v1246_v1 = vsel %vm88_vm2, %v1238_v49, %v1231_v34 }
 0x15c   :  { %1027 = vst.msk [vmem:[#allocation2 + $0x60] sm:$0xff] %vm1014_vm10, %v1010_v53  ;;  %v2133_v37 = vpack.i.bf16 %v1067_v6, %v3011_v13  ;;  %v1204_v48 = vrot.slane %v1067_v6, 7  ;;  %v1268_v8 = vrot.slane %v1067_v6, 2  ;;  %v1171_v3 = vrot.slane %v1067_v6, 6 }
 0x15d   :  { %v1236_v55 = vrot.slane %v1067_v6, 1  ;;  %v1262_v53 = vsel %vm1254_vm9, %v1246_v1, 0.0 }
 0x15e   :  { %2134 = vrot.lane.b32.xlu1 %v2133_v37, %s2179_s16  ;;  %v1209_v4 = vsel %vm55_vm0, %v1203_v9, %v1204_v48  ;;  %v3105_v25 = vsel %vm1271_vm11, %v1267_v33, %v1268_v8  ;;  %v3111_v21 = vsel %vm1174_vm12, %v1170_v18, %v1171_v3 }
 0x15f   :  { %v2128_v24 = vpack.i.bf16 %v1209_v4, %v1227_v39  ;;  %v1241_v32 = vsel %vm88_vm2, %v1235_v61, %v1236_v55  ;;  %v3544_v4 = vsel %vm2888_vm3, %v2924_v17, 0.0 }
 0x161   :  { %2129 = vrot.lane.b32.xlu0 %v2128_v24, %s2178_s11 }
 0x163   :  { %v1043_v52 = vld [vmem:[#allocation2 + $0x60] ss:$2 sm:$0xff]  ;;  %v1059_v15 = vld [vmem:[#allocation2 + $0x61] ss:$2 sm:$0xff] }
 0x164   :  { %v3114_v0 = vmax.f32 %v1043_v52, %v1059_v15 }
 0x166   :  { %v1205_v33 = vrot.slane %v3114_v0, 7  ;;  %v1237_v20 = vrot.slane %v3114_v0, 1  ;;  %v1172_v26 = vrot.slane %v3114_v0, 6  ;;  %v1269_v18 = vrot.slane %v3114_v0, 2 }
 0x167   :  { %v2100_v35 = vpop.permute.xlu1 %2099 }
 0x168   :  { %v1208_v40 = vsel %vm55_vm0, %v1204_v48, %v1205_v33  ;;  %v1240_v29 = vsel %vm88_vm2, %v1236_v55, %v1237_v20  ;;  %v3141_v30 = vsel %vm1174_vm12, %v1171_v3, %v1172_v26  ;;  %v3151_v61 = vsel %vm1271_vm11, %v1268_v8, %v1269_v18 }
 0x169   :  { %v1229_v42 = vsel %vm1221_vm15, %v1208_v40, 0.0  ;;  %v1260_v57 = vsel %vm1252_vm1, %v1240_v29, 0.0  ;;  %v1197_v13 = vsel %vm3124_vm5, %v3141_v30, 0.0  ;;  %v1293_v59 = vsel %vm3132_vm6, %v3151_v61, 0.0 }
 0x16a   :  { %1316 = vrot.lane.b32.xlu1 %v1229_v42, %s2178_s11  ;;  %v2138_v23 = vpack.i.bf16 %v1260_v57, %v1241_v32  ;;  %v1239_v9 = vsel %vm88_vm2, %v1237_v20, %v1238_v49  ;;  %v1207_v14 = vsel %vm55_vm0, %v1205_v33, %v1206_v58  ;;  %v2101_v38 = vunpack.i.l.bf16 %v2100_v35 }
 0x16b   :  { %v2105_v6 = vpop.permute.xlu1 %2104  ;;  %vm1400_vm15 = vcmask 523264   ;;  %vm1409_vm0 = vcmask 785408   ;;  %v2102_v58 = vunpack.i.h.bf16 %v2100_v35  ;;  %v1272_v61 = vsel %vm1271_vm11, %v1269_v18, %v3547_v50 }
 0x16c   :  { %2139 = vrot.lane.b32.xlu0 %v2138_v23, %s2180_s0  ;;  %v2106_v37 = vunpack.i.l.bf16 %v2105_v6  ;;  %v1392_v34 = vsel %vm1014_vm10, %v3543_v36, %v2101_v38  ;;  %v2107_v44 = vunpack.i.h.bf16 %v2105_v6  ;;  %v1175_v30 = vsel %vm1174_vm12, %v1172_v26, %v3548_v11 }
 0x16d   :  { %v1393_v28 = vsel %vm1014_vm10, %v2833_v43, %v2102_v58  ;;  %v3549_v18 = vsel %vm2730_vm13, %v2746_v62, 0.0  ;;  %v1677_v62 = vld [vmem:[%s3512_s3 + $0xf8] sm:$0xff]  ;;  %vm2181_vm2 = vmmov 0  }
 0x16e   :  { %1380 = vrot.lane.b32.xlu1 %v1239_v9, %s2180_s0  ;;  %v1401_v60 = vsel %vm1400_vm15, %v1392_v34, %v2106_v37  ;;  %v1402_v63 = vsel %vm1400_vm15, %v1393_v28, %v2107_v44  ;;  %v1661_v44 = vld [vmem:[%s3512_s3 + $0x78] sm:$0xff]  ;;  %1979 = vmatprep.subr.mxu1 %v1677_v62  ;;  %v1675_v28 = vld [vmem:[%s3512_s3 + $0xe8] sm:$0xff] }
 0x16f   :  { %1980 = vmatpush3.msra.mxu1 %v1661_v44 }
 0x170   :  { %1348 = vrot.lane.b32.xlu0 %v3114_v0, %s2179_s16 }
 0x172   :  { %1350 = vrot.lane.b32.xlu1 %v2699_v41, %s2179_s16 }
 0x174   :  { %1318 = vrot.lane.b32.xlu0 %v1207_v14, %s2178_s11 }
 0x178   :  { %1382 = vrot.lane.b32.xlu0 %v1262_v53, %s2180_s0 }
 0x180   :  { %v2110_v48 = vpop.permute.xlu0 %2109 }
 0x181   :  { %v2111_v8 = vunpack.i.l.bf16 %v2110_v48  ;;  %v2112_v22 = vunpack.i.h.bf16 %v2110_v48 }
 0x183   :  { %v1410_v3 = vsel %vm1409_vm0, %v1401_v60, %v2111_v8  ;;  %v1411_v39 = vsel %vm1409_vm0, %v1402_v63, %v2112_v22  ;;  %v1676_v60 = vld [vmem:[%s3512_s3 + $0xf0] sm:$0xff] }
 0x184   :  { %1532 = vmatmul.mubr.f32.vlgmr.msra.gmra.mxu0 %v1410_v3  ;;  %v1660_v3 = vld [vmem:[%s3512_s3 + $0x70] sm:$0xff]  ;;  %1981 = vmatprep.subr.mxu1 %v1676_v60 }
 0x185   :  { %1969 = vmatprep.mubr.msk.f32.mxu0 %vm1014_vm10, %v3544_v4  ;;  %1982 = vmatpush3.msra.mxu1 %v1660_v3 }
 0x186   :  { %1983 = vmatprep.subr.mxu1 %v1675_v28  ;;  %v1646_v28 = vld [vmem:[%s3512_s3] sm:$0xff] }
 0x188   :  { %1537 = vmatmul.mubr.f32.gmra.mxu0 %v1411_v39  ;;  %v1659_v39 = vld [vmem:[%s3512_s3 + $0x68] sm:$0xff] }
 0x189   :  { %1970 = vmatprep.mubr.msk.f32.mxu0 %vm1014_vm10, %v2993_v31  ;;  %1984 = vmatpush3.msra.mxu1 %v1659_v39 }
 0x19a   :  { %v2120_v46 = vpop.permute.xlu0 %2119 }
 0x19b   :  { %v2121_v52 = vunpack.i.l.bf16 %v2120_v46  ;;  %v2122_v40 = vunpack.i.h.bf16 %v2120_v46  ;;  %v1673_v46 = vld [vmem:[%s3512_s3 + $0xd8] sm:$0xff] }
 0x19d   :  { %v2115_v16 = vpop.permute.xlu1 %2114 }
 0x19e   :  { %v2116_v24 = vunpack.i.l.bf16 %v2115_v16  ;;  %v2117_v12 = vunpack.i.h.bf16 %v2115_v16  ;;  %v1674_v16 = vld [vmem:[%s3512_s3 + $0xe0] sm:$0xff] }
 0x19f   :  { %1985 = vmatprep.subr.mxu1 %v1674_v16 }
 0x1a0   :  { %v1394_v17 = vsel %vm1014_vm10, %v3545_v56, %v2116_v24  ;;  %v1395_v31 = vsel %vm1014_vm10, %v2999_v5, %v2117_v12  ;;  %v1658_v24 = vld [vmem:[%s3512_s3 + $0x60] sm:$0xff]  ;;  %v1657_v12 = vld [vmem:[%s3512_s3 + $0x58] sm:$0xff]  ;;  %v1672_v56 = vld [vmem:[%s3512_s3 + $0xd0] sm:$0xff] }
 0x1a1   :  { %v1403_v55 = vsel %vm1400_vm15, %v1394_v17, %v2121_v52  ;;  %v1404_v2 = vsel %vm1400_vm15, %v1395_v31, %v2122_v40  ;;  %1986 = vmatpush3.msra.mxu1 %v1658_v24  ;;  %v1656_v17 = vld [vmem:[%s3512_s3 + $0x50] sm:$0xff]  ;;  %v1671_v52 = vld [vmem:[%s3512_s3 + $0xc8] sm:$0xff]  ;;  %v1654_v31 = vld [vmem:[%s3512_s3 + $0x40] sm:$0xff] }
 0x1a2   :  { %1987 = vmatprep.subr.mxu1 %v1673_v46  ;;  %v1669_v40 = vld [vmem:[%s3512_s3 + $0xb8] sm:$0xff] }
 0x1a3   :  { %1988 = vmatpush3.msra.mxu1 %v1657_v12 }
 0x1a4   :  { %1989 = vmatprep.subr.mxu1 %v1672_v56 }
 0x1a5   :  { %1990 = vmatpush3.msra.mxu1 %v1656_v17 }
 0x1a6   :  { %1991 = vmatprep.subr.mxu1 %v1671_v52 }
 0x1b6   :  { %v2125_v43 = vpop.permute.xlu1 %2124 }
 0x1b7   :  { %v2126_v15 = vunpack.i.l.bf16 %v2125_v43  ;;  %v2127_v33 = vunpack.i.h.bf16 %v2125_v43  ;;  %v1655_v43 = vld [vmem:[%s3512_s3 + $0x48] sm:$0xff] }
 0x1b8   :  { %1992 = vmatpush3.msra.mxu1 %v1655_v43 }
 0x1b9   :  { %v1412_v20 = vsel %vm1409_vm0, %v1403_v55, %v2126_v15  ;;  %v1413_v45 = vsel %vm1409_vm0, %v1404_v2, %v2127_v33  ;;  %v1670_v33 = vld [vmem:[%s3512_s3 + $0xc0] sm:$0xff]  ;;  %v1653_v2 = vld [vmem:[%s3512_s3 + $0x38] sm:$0xff] }
 0x1ba   :  { %1542 = vmatmul.mubr.f32.gmra.mxu0 %v1412_v20  ;;  %1993 = vmatprep.subr.mxu1 %v1670_v33 }
 0x1bb   :  { %1971 = vmatprep.mubr.msk.f32.mxu0 %vm1014_vm10, %v1291_v7  ;;  %1994 = vmatpush3.msra.mxu1 %v1654_v31 }
 0x1bc   :  { %1995 = vmatprep.subr.mxu1 %v1669_v40 }
 0x1bd   :  { %1996 = vmatpush3.msra.mxu1 %v1653_v2  ;;  %v1693_v2 = vld [vmem:[%s3512_s3 + $0x178] sm:$0xff] }
 0x1be   :  { %1547 = vmatmul.mubr.f32.gmra.mxu0 %v1413_v45  ;;  %v1668_v45 = vld [vmem:[%s3512_s3 + $0xb0] sm:$0xff] }
 0x1bf   :  { %1972 = vmatprep.mubr.msk.f32.mxu0 %vm1014_vm10, %v3105_v25  ;;  %1997 = vmatprep.subr.mxu1 %v1668_v45  ;;  %v1708_v45 = vld [vmem:[%s3512_s3 + $0x1f0] sm:$0xff] }
 0x1d0   :  { %v2135_v32 = vpop.permute.xlu1 %2134 }
 0x1d1   :  { %v2136_v57 = vunpack.i.l.bf16 %v2135_v32  ;;  %v2137_v35 = vunpack.i.h.bf16 %v2135_v32  ;;  %v1651_v32 = vld [vmem:[%s3512_s3 + $0x28] sm:$0xff] }
 0x1d3   :  { %v2130_v29 = vpop.permute.xlu0 %2129 }
 0x1d4   :  { %v2131_v42 = vunpack.i.l.bf16 %v2130_v29  ;;  %v2132_v5 = vunpack.i.h.bf16 %v2130_v29  ;;  %v1652_v29 = vld [vmem:[%s3512_s3 + $0x30] sm:$0xff] }
 0x1d5   :  { %1998 = vmatpush3.msra.mxu1 %v1652_v29 }
 0x1d6   :  { %v1396_v19 = vsel %vm1014_vm10, %v3546_v27, %v2131_v42  ;;  %v1397_v25 = vsel %vm1014_vm10, %v3111_v21, %v2132_v5  ;;  %v1667_v42 = vld [vmem:[%s3512_s3 + $0xa8] sm:$0xff]  ;;  %v1666_v5 = vld [vmem:[%s3512_s3 + $0xa0] sm:$0xff] }
 0x1d7   :  { %v1405_v9 = vsel %vm1400_vm15, %v1396_v19, %v2136_v57  ;;  %v1406_v54 = vsel %vm1400_vm15, %v1397_v25, %v2137_v35  ;;  %1999 = vmatprep.subr.mxu1 %v1667_v42  ;;  %v1650_v27 = vld [vmem:[%s3512_s3 + $0x20] sm:$0xff]  ;;  %v1665_v19 = vld [vmem:[%s3512_s3 + $0x98] sm:$0xff] }
 0x1d8   :  { %2000 = vmatpush3.msra.mxu1 %v1651_v32  ;;  %v1649_v57 = vld [vmem:[%s3512_s3 + $0x18] sm:$0xff]  ;;  %v1692_v32 = vld [vmem:[%s3512_s3 + $0x170] sm:$0xff] }
 0x1d9   :  { %2001 = vmatprep.subr.mxu1 %v1666_v5  ;;  %v1707_v5 = vld [vmem:[%s3512_s3 + $0x1e8] sm:$0xff] }
 0x1da   :  { %2002 = vmatpush3.msra.mxu1 %v1650_v27  ;;  %v1691_v27 = vld [vmem:[%s3512_s3 + $0x168] sm:$0xff] }
 0x1db   :  { %2003 = vmatprep.subr.mxu1 %v1665_v19  ;;  %v1706_v19 = vld [vmem:[%s3512_s3 + $0x1e0] sm:$0xff] }
 0x1dc   :  { %v1317_v23 = vpop.permute.xlu1 %1316  ;;  %2004 = vmatpush3.msra.mxu1 %v1649_v57  ;;  %v1690_v57 = vld [vmem:[%s3512_s3 + $0x160] sm:$0xff] }
 0x1dd   :  { %v1398_v47 = vsel %vm1014_vm10, %v1197_v13, %v1317_v23  ;;  %v1648_v23 = vld [vmem:[%s3512_s3 + $0x10] sm:$0xff] }
 0x1de   :  { %v2140_v7 = vpop.permute.xlu0 %2139 }
 0x1df   :  { %v2141_v49 = vunpack.i.l.bf16 %v2140_v7  ;;  %v2142_v14 = vunpack.i.h.bf16 %v2140_v7  ;;  %v1664_v7 = vld [vmem:[%s3512_s3 + $0x90] sm:$0xff] }
 0x1e0   :  { %v1381_v6 = vpop.permute.xlu1 %1380  ;;  %2005 = vmatprep.subr.mxu1 %v1664_v7  ;;  %v1705_v7 = vld [vmem:[%s3512_s3 + $0x1d8] sm:$0xff] }
 0x1e1   :  { %v1414_v1 = vsel %vm1409_vm0, %v1405_v9, %v2141_v49  ;;  %v1415_v21 = vsel %vm1409_vm0, %v1406_v54, %v2142_v14  ;;  %v1663_v49 = vld [vmem:[%s3512_s3 + $0x88] sm:$0xff]  ;;  %2006 = vmatpush3.msra.mxu1 %v1648_v23  ;;  %v1689_v23 = vld [vmem:[%s3512_s3 + $0x158] sm:$0xff] }
 0x1e2   :  { %v1349_v53 = vpop.permute.xlu0 %1348  ;;  %1552 = vmatmul.mubr.f32.gmra.mxu0 %v1414_v1  ;;  %2007 = vmatprep.subr.mxu1 %v1663_v49  ;;  %v1704_v49 = vld [vmem:[%s3512_s3 + $0x1d0] sm:$0xff] }
 0x1e3   :  { %1973 = vmatprep.mubr.msk.f32.mxu0 %vm1014_vm10, %v1293_v59  ;;  %v1407_v38 = vsel %vm1400_vm15, %v1398_v47, %v1349_v53 }
 0x1e4   :  { %v1416_v59 = vsel %vm1409_vm0, %v1407_v38, %v1381_v6  ;;  %v1351_v58 = vpop.permute.xlu1 %1350 }
 0x1e6   :  { %v1319_v37 = vpop.permute.xlu0 %1318  ;;  %1557 = vmatmul.mubr.f32.gmra.mxu0 %v1415_v21 }
 0x1e7   :  { %1974 = vmatprep.mubr.msk.f32.mxu0 %vm1014_vm10, %v1272_v61  ;;  %v1399_v13 = vsel %vm1014_vm10, %v1175_v30, %v1319_v37 }
 0x1e8   :  { %v1408_v41 = vsel %vm1400_vm15, %v1399_v13, %v1351_v58 }
 0x1ea   :  { %v1383_v48 = vpop.permute.xlu0 %1382  ;;  %1562 = vmatmul.mubr.f32.gmra.mxu0 %v1416_v59 }
 0x1eb   :  { %1975 = vmatprep.mubr.msk.f32.mxu0 %vm1014_vm10, %v3549_v18  ;;  %v1417_v0 = vsel %vm1409_vm0, %v1408_v41, %v1383_v48 }
 0x1ee   :  { %1567 = vmatmul.mubr.f32.gmra.mxu0 %v1417_v0 }
 0x244   :  { %v1533_v26 = vpop.f32.mrf.mxu0 }
 0x245   :  { %v1534_v8 = vadd.f32 %v3259_v10, %v1533_v26 }
 0x246   :  { %v1535_v36 = vpop.f32.mrf.mxu0 }
 0x247   :  { %v1572_v34 = vmax.f32 %v1534_v8, 0.0 }
 0x248   :  { %v1538_v51 = vpop.f32.mrf.mxu0 }
 0x249   :  { %1580 = vst.msk [vmem:[#allocation3] sm:$0xff] %vm1400_vm15, %v1572_v34  ;;  %v1539_v22 = vadd.f32 %v3259_v10, %v1538_v51 }
 0x24a   :  { %v1540_v4 = vpop.f32.mrf.mxu0 }
 0x24b   :  { %v1573_v63 = vmax.f32 %v1539_v22, 0.0  ;;  %v1647_v4 = vld [vmem:[%s3512_s3 + $0x8] sm:$0xff] }
 0x24c   :  { %2008 = vmatpush3.msra.mxu1 %v1647_v4 }
 0x24d   :  { %1581 = vst.msk [vmem:[#allocation3 + $0x8] sm:$0xff] %vm1400_vm15, %v1573_v63  ;;  %v1709_v63 = vld [vmem:[%s3512_s3 + $0x1f8] sm:$0xff] }
 0x254   :  { %v1588_v15 = vld [vmem:[#allocation3] ss:$2 sm:$0xff]  ;;  %v1596_v55 = vld [vmem:[#allocation3 + $0x1] ss:$2 sm:$0xff] }
 0x255   :  { %v1603_v20 = vmax.f32 %v1588_v15, %v1596_v55 }
 0x257   :  { %1607 = vst.msk [vmem:[#allocation4] sm:$0xff] %vm1400_vm15, %v1603_v20 }
 0x27a   :  { %v1543_v9 = vpop.f32.mrf.mxu0 }
 0x27b   :  { %v1544_v14 = vadd.f32 %v3259_v10, %v1543_v9  ;;  %v1688_v9 = vld [vmem:[%s3512_s3 + $0x150] sm:$0xff] }
 0x27c   :  { %v1545_v1 = vpop.f32.mrf.mxu0 }
 0x27d   :  { %v1574_v25 = vmax.f32 %v1544_v14, 0.0  ;;  %v1703_v14 = vld [vmem:[%s3512_s3 + $0x1c8] sm:$0xff] }
 0x27e   :  { %v1548_v35 = vpop.f32.mrf.mxu0  ;;  %v1687_v1 = vld [vmem:[%s3512_s3 + $0x148] sm:$0xff] }
 0x27f   :  { %1582 = vst.msk [vmem:[#allocation3 + $0x10] sm:$0xff] %vm1400_vm15, %v1574_v25  ;;  %v1549_v53 = vadd.f32 %v3259_v10, %v1548_v35  ;;  %v1702_v25 = vld [vmem:[%s3512_s3 + $0x1c0] sm:$0xff] }
 0x280   :  { %v1550_v54 = vpop.f32.mrf.mxu0  ;;  %v1686_v35 = vld [vmem:[%s3512_s3 + $0x140] sm:$0xff] }
 0x281   :  { %v1575_v47 = vmax.f32 %v1549_v53, 0.0  ;;  %v1701_v53 = vld [vmem:[%s3512_s3 + $0x1b8] sm:$0xff] }
 0x282   :  { %v1685_v54 = vld [vmem:[%s3512_s3 + $0x138] sm:$0xff] }
 0x283   :  { %1583 = vst.msk [vmem:[#allocation3 + $0x18] sm:$0xff] %vm1400_vm15, %v1575_v47  ;;  %v1700_v47 = vld [vmem:[%s3512_s3 + $0x1b0] sm:$0xff] }
 0x28a   :  { %v1590_v6 = vld [vmem:[#allocation3 + $0x10] ss:$2 sm:$0xff]  ;;  %v1598_v21 = vld [vmem:[#allocation3 + $0x11] ss:$2 sm:$0xff] }
 0x28b   :  { %v1604_v38 = vmax.f32 %v1590_v6, %v1598_v21  ;;  %v1684_v6 = vld [vmem:[%s3512_s3 + $0x130] sm:$0xff]  ;;  %v1699_v21 = vld [vmem:[%s3512_s3 + $0x1a8] sm:$0xff] }
 0x28d   :  { %1608 = vst.msk [vmem:[#allocation4 + $0x8] sm:$0xff] %vm1400_vm15, %v1604_v38  ;;  %v1683_v38 = vld [vmem:[%s3512_s3 + $0x128] sm:$0xff] }
 0x2a2   :  { %v1553_v37 = vpop.f32.mrf.mxu0 }
 0x2a3   :  { %v1554_v50 = vadd.f32 %v3259_v10, %v1553_v37  ;;  %v1698_v37 = vld [vmem:[%s3512_s3 + $0x1a0] sm:$0xff] }
 0x2a4   :  { %v1555_v61 = vpop.f32.mrf.mxu0 }
 0x2a5   :  { %v1576_v11 = vmax.f32 %v1554_v50, 0.0  ;;  %v1682_v50 = vld [vmem:[%s3512_s3 + $0x120] sm:$0xff]  ;;  %v1697_v61 = vld [vmem:[%s3512_s3 + $0x198] sm:$0xff] }
 0x2a6   :  { %v1558_v30 = vpop.f32.mrf.mxu0 }
 0x2a7   :  { %1584 = vst.msk [vmem:[#allocation3 + $0x20] sm:$0xff] %vm1400_vm15, %v1576_v11  ;;  %v1559_v13 = vadd.f32 %v3259_v10, %v1558_v30  ;;  %v1681_v11 = vld [vmem:[%s3512_s3 + $0x118] sm:$0xff]  ;;  %v1696_v30 = vld [vmem:[%s3512_s3 + $0x190] sm:$0xff] }
 0x2a8   :  { %v1560_v59 = vpop.f32.mrf.mxu0 }
 0x2a9   :  { %v1577_v48 = vmax.f32 %v1559_v13, 0.0  ;;  %v1680_v13 = vld [vmem:[%s3512_s3 + $0x110] sm:$0xff]  ;;  %v1695_v59 = vld [vmem:[%s3512_s3 + $0x188] sm:$0xff] }
 0x2aa   :  { %v1563_v58 = vpop.f32.mrf.mxu0 }
 0x2ab   :  { %1585 = vst.msk [vmem:[#allocation3 + $0x28] sm:$0xff] %vm1400_vm15, %v1577_v48  ;;  %v1564_v18 = vadd.f32 %v3259_v10, %v1563_v58  ;;  %v1679_v48 = vld [vmem:[%s3512_s3 + $0x108] sm:$0xff] }
 0x2ac   :  { %v1565_v41 = vpop.f32.mrf.mxu0 }
 0x2ad   :  { %v1578_v0 = vmax.f32 %v1564_v18, 0.0  ;;  %v1694_v18 = vld [vmem:[%s3512_s3 + $0x180] sm:$0xff] }
 0x2ae   :  { %v1568_v26 = vpop.f32.mrf.mxu0  ;;  %v1678_v41 = vld [vmem:[%s3512_s3 + $0x100] sm:$0xff] }
 0x2af   :  { %1586 = vst.msk [vmem:[#allocation3 + $0x30] sm:$0xff] %vm1400_vm15, %v1578_v0  ;;  %v1569_v8 = vadd.f32 %v3259_v10, %v1568_v26  ;;  %v1662_v10 = vld [vmem:[%s3512_s3 + $0x80] sm:$0xff] }
 0x2b0   :  { %v1570_v36 = vpop.f32.mrf.mxu0  ;;  %2009 = vmatprep.subr.mxu1 %v1662_v10 }
 0x2b1   :  { %v1579_v34 = vmax.f32 %v1569_v8, 0.0  ;;  %2010 = vmatpush3.msra.mxu1 %v1646_v28  ;;  %v1859_v8 = vld [vmem:[%s3513_s4 + $0x18] sm:$0xff]  ;;  %v1858_v36 = vld [vmem:[%s3513_s4 + $0x10] sm:$0xff] }
 0x2b2   :  { %v1592_v51 = vld [vmem:[#allocation3 + $0x20] ss:$2 sm:$0xff]  ;;  %v1600_v62 = vld [vmem:[#allocation3 + $0x21] ss:$2 sm:$0xff]  ;;  %2014 = vmatprep.subr.mxu1 %v1709_v63  ;;  %2055 = vmatpush3.msra.mxu0 %v1859_v8 }
 0x2b3   :  { %v1605_v44 = vmax.f32 %v1592_v51, %v1600_v62  ;;  %1587 = vst.msk [vmem:[#allocation3 + $0x38] sm:$0xff] %vm1400_vm15, %v1579_v34  ;;  %v3550_v34 = vmov 0.0   ;;  %v1857_v51 = vld [vmem:[%s3513_s4 + $0x8] sm:$0xff]  ;;  %v1856_v62 = vld [vmem:[%s3513_s4] sm:$0xff] }
 0x2b4   :  { %2056 = vmatprep.subr.mxu0 %v3550_v34  ;;  %2062 = vmatprep.mubr.msk.f32.mxu0 %vm2181_vm2, %v3550_v34 }
 0x2b5   :  { %1609 = vst.msk [vmem:[#allocation4 + $0x10] sm:$0xff] %vm1400_vm15, %v1605_v44  ;;  %2057 = vmatpush3.msra.mxu0 %v1858_v36 }
 0x2b6   :  { %2058 = vmatprep.subr.mxu0 %v3550_v34 }
 0x2b7   :  { %2059 = vmatpush3.msra.mxu0 %v1857_v51 }
 0x2b8   :  { %2060 = vmatprep.subr.mxu0 %v3550_v34 }
 0x2b9   :  { %2061 = vmatpush3.msra.mxu0 %v1856_v62 }
 0x2ba   :  { %v1594_v60 = vld [vmem:[#allocation3 + $0x30] ss:$2 sm:$0xff]  ;;  %v1602_v22 = vld [vmem:[#allocation3 + $0x31] ss:$2 sm:$0xff] }
 0x2bb   :  { %v1606_v3 = vmax.f32 %v1594_v60, %v1602_v22 }
 0x2bd   :  { %1610 = vst.msk [vmem:[#allocation4 + $0x18] sm:$0xff] %vm1400_vm15, %v1606_v3  ;;  %v1976_v3 = vld [vmem:[%s3512_s3 + $0x200] ss:$0 sm:$0xff]  ;;  %s2153_s3 = scalar_lea.vmem %s1946_s30, 64 }
 0x2be   :  { %p2154_p0 = scmp.ne.s32.totalorder %s1946_s30, %s2153_s3  ;;  %p2159_p2 = scmp.lt.s32.totalorder %s2153_s3, %s2153_s3 }
 0x2c0   :  { %p2160_p3 = por %p2159_p2, %p2158_p1 }
 0x2c2   :  { %p2161_p4 = pnand %p2160_p3, %p2154_p0 }
 0x2c4   :  { %v1621_v39 = vld [vmem:[#allocation4 + $0x5] ss:$8 sm:$0xf]  ;;  %v1625_v16 = vld [vmem:[#allocation4 + $0x7] ss:$8 sm:$0xf] }
 0x2c5   :  { %v2148_v24 = vpack.i.bf16 %v1621_v39, %v1625_v16  ;;  %v1613_v46 = vld [vmem:[#allocation4 + $0x1] ss:$8 sm:$0xf]  ;;  %v1617_v12 = vld [vmem:[#allocation4 + $0x3] ss:$8 sm:$0xf] }
 0x2c6   :  { %v2143_v56 = vpack.i.bf16 %v1613_v46, %v1617_v12  ;;  %v1615_v33 = vld [vmem:[#allocation4 + $0x2] ss:$8 sm:$0xf]  ;;  %v1611_v20 = vld [vmem:[#allocation4] ss:$8 sm:$0xf] }
 0x2c7   :  { %2149 = vrot.lane.b32.xlu0 %v2148_v24, %s2179_s16  ;;  %v1623_v29 = vld [vmem:[#allocation4 + $0x6] ss:$8 sm:$0xf]  ;;  %v1619_v0 = vld [vmem:[#allocation4 + $0x4] ss:$8 sm:$0xf] }
 0x2c8   :  { %2144 = vrot.lane.b32.xlu1 %v2143_v56, %s2179_s16  ;;  %v1977_v24 = vld [vmem:[%s3513_s4 + $0x20] ss:$0 sm:$0xff] }
 0x339   :  { %v3382_v17 = vpop.permute.xlu0 %2149 }
 0x33a   :  { %v2145_v52 = vpop.permute.xlu1 %2144  ;;  %v2151_v43 = vunpack.i.l.bf16 %v3382_v17  ;;  %v2152_v58 = vunpack.i.h.bf16 %v3382_v17 }
 0x33b   :  { %v2147_v15 = vunpack.i.h.bf16 %v2145_v52  ;;  %v2146_v55 = vunpack.i.l.bf16 %v2145_v52 }
 0x33c   :  { %v1645_v42 = vsel %vm1400_vm15, %v1623_v29, %v2151_v43  ;;  %v1644_v26 = vsel %vm1400_vm15, %v1619_v0, %v2152_v58 }
 0x33d   :  { %v1643_v31 = vsel %vm1400_vm15, %v1615_v33, %v2146_v55  ;;  %v1642_v40 = vsel %vm1400_vm15, %v1611_v20, %v2147_v15 }
 0x33e   :  { %1779 = vmatprep.mubr.f32.mxu1 %v1643_v31 }
 0x33f   :  { %1780 = vmatmul.mubr.f32.vlgmr.msra.gmra.mxu1 %v1642_v40 }
 0x340   :  { %2015 = vmatpush3.msra.mxu1 %v1693_v2  ;;  %1849 = vmatprep.mubr.f32.mxu1 %v1645_v42 }
 0x341   :  { %2016 = vmatprep.subr.mxu1 %v1708_v45 }
 0x342   :  { %2017 = vmatpush3.msra.mxu1 %v1692_v32 }
 0x343   :  { %2018 = vmatprep.subr.mxu1 %v1707_v5 }
 0x344   :  { %2019 = vmatpush3.msra.mxu1 %v1691_v27 }
 0x345   :  { %2020 = vmatprep.subr.mxu1 %v1706_v19 }
 0x346   :  { %2021 = vmatpush3.msra.mxu1 %v1690_v57 }
 0x347   :  { %2022 = vmatprep.subr.mxu1 %v1705_v7 }
 0x348   :  { %2023 = vmatpush3.msra.mxu1 %v1689_v23 }
 0x349   :  { %2024 = vmatprep.subr.mxu1 %v1704_v49 }
 0x34a   :  { %2025 = vmatpush3.msra.mxu1 %v1688_v9 }
 0x34b   :  { %2026 = vmatprep.subr.mxu1 %v1703_v14 }
 0x34c   :  { %2027 = vmatpush3.msra.mxu1 %v1687_v1 }
 0x34d   :  { %2028 = vmatprep.subr.mxu1 %v1702_v25 }
 0x34e   :  { %2029 = vmatpush3.msra.mxu1 %v1686_v35 }
 0x34f   :  { %2030 = vmatprep.subr.mxu1 %v1701_v53 }
 0x350   :  { %2031 = vmatpush3.msra.mxu1 %v1685_v54 }
 0x351   :  { %2032 = vmatprep.subr.mxu1 %v1700_v47 }
 0x352   :  { %2033 = vmatpush3.msra.mxu1 %v1684_v6 }
 0x353   :  { %2034 = vmatprep.subr.mxu1 %v1699_v21 }
 0x354   :  { %2035 = vmatpush3.msra.mxu1 %v1683_v38 }
 0x355   :  { %2036 = vmatprep.subr.mxu1 %v1698_v37 }
 0x356   :  { %2037 = vmatpush3.msra.mxu1 %v1682_v50 }
 0x357   :  { %2038 = vmatprep.subr.mxu1 %v1697_v61 }
 0x358   :  { %2039 = vmatpush3.msra.mxu1 %v1681_v11 }
 0x359   :  { %2040 = vmatprep.subr.mxu1 %v1696_v30 }
 0x35a   :  { %2041 = vmatpush3.msra.mxu1 %v1680_v13 }
 0x35b   :  { %2042 = vmatprep.subr.mxu1 %v1695_v59 }
 0x35c   :  { %2043 = vmatpush3.msra.mxu1 %v1679_v48 }
 0x35d   :  { %2044 = vmatprep.subr.mxu1 %v1694_v18 }
 0x35e   :  { %2045 = vmatpush3.msra.mxu1 %v1678_v41 }
 0x35f   :  { %1850 = vmatmul.mubr.f32.vlgmr.msra.gmra.mxu1 %v1644_v26 }
 0x3ff   :  { %v2011_v44 = vpop.f32.mrf.mxu1 }
 0x401   :  { %v2012_v60 = vpop.f32.mrf.mxu1 }
 0x402   :  { %v2013_v22 = vadd.f32 %v2012_v60, %v2011_v44 }
 0x404   :  { %v1782_v28 = vadd.f32 %v2013_v22, %v1976_v3 }
 0x41f   :  { %v2046_v4 = vpop.f32.mrf.mxu1 }
 0x421   :  { %v2047_v10 = vpop.f32.mrf.mxu1 }
 0x422   :  { %v2048_v63 = vadd.f32 %v2047_v10, %v2046_v4 }
 0x424   :  { %v1852_v39 = vadd.f32 %v2048_v63, %v1782_v28 }
 0x426   :  { %v1855_v16 = vmax.f32 %v1852_v39, 0.0 }
 0x428   :  { %2063 = vmatmul.mubr.msk.f32.vlgmr.msra.gmra.mxu0 %vm1014_vm10, %v1855_v16 }
 0x4e8   :  { %v1934_v46 = vpop.f32.mrf.mxu0 }
 0x4e9   :  { %v1935_v12 = vadd.f32 %v1977_v24, %v1934_v46 }
 0x4ea   :  { %v2064_v56 = vpop.f32.mrf.mxu0 }
 0x4eb   :  { %1938 = vst [vmem:[#allocation5] sm:$0xf] %v1935_v12 }
 0x4ec   :  { %2164 = shalt.err (!%p2161_p4)
}
 0x4ed   :  { %1948 = dma.vmem_to_hbm [thread:$0]  %s1946_s30, 64, %s3514_s5, [#allocation6]  }
 0x4ee   :  { %2173 = dma.done.wait [#allocation6], 64  }
 0x4ef   :  { %2174 = vsyncadd [#allocation6], 4294967232 }
 0x4f0   :  { %1952 = vsyncpa [#allocation6], 1 }

</bundles_post_ra>
